<compile_context>
chip_gen: v7x
topology: tpu7x:2x2x1
jax: 0.10.0
libtpu: 0.0.40
codegen_flags: <defaults>
</compile_context>

<pallas_src>
import jax
import jax.numpy as jnp
from jax import lax
from jax.experimental import pallas as pl
from jax.experimental.pallas import tpu as pltpu

_LANE = 128


def _round_up(n, m):
    return (n + m - 1) // m * m


def _vmem_params():
    """Per-generation sizing: bigger per-step tiles on 128 MiB-VMEM parts (v5e/v6e),
    conservative defaults that are safe for v7x's 64 MiB VMEM otherwise."""
    vmem = None
    try:
        vmem = getattr(pltpu.get_tpu_info(), "vmem_capacity_bytes", None)
    except Exception:
        vmem = None
    if vmem is not None and vmem >= 100 * 1024 * 1024:
        return 20 * 1024 * 1024, 96 * 1024 * 1024   # (tile budget, vmem_limit_bytes)
    return 8 * 1024 * 1024, 32 * 1024 * 1024


def _pick_rows(hp, wp, cin, cout, in_item, out_item, tap_item, pool, budget):
    """Pooled output rows per grid step, sized against the VMEM budget.
    Prefers an exact divisor of hp near the budget size; otherwise the grid is
    cdiv and the kernel masks the partial last tile."""
    pf = 4 if pool else 1
    fixed = ((9 * cin + cin * cout) * tap_item + (cin + cout) * 4) * 2      # weights (x2 buffers)
    fixed += 2 * pf * wp * cin * in_item * 2 * 2                            # two halo blocks (x2 buffers)
    per_row = (pf * wp * cin * in_item + wp * cout * out_item) * 2          # body/out blocks (x2 buffers)
    per_row += wp * cin * (3 * tap_item + 8) + wp * cout * 4                # in-kernel temporaries
    rows = int(max(1, (budget - fixed) // max(per_row, 1)))
    rows = max(1, min(rows, hp, 256))
    for th in range(rows, max(1, (3 * rows) // 4) - 1, -1):
        if hp % th == 0:
            return th
    return rows


# ----------------------------------------------------------------------------
# One conv_dw half: [optional fused maxpool] -> dw3x3(+bias)+ReLU -> 1x1(+bias)+ReLU
# ----------------------------------------------------------------------------
def _conv_stage(x, wdw, b1, wpw, b2, *, pool, hp, wp, wp_valid, mask_w_out,
                tap_dtype, out_dtype, budget, vmem_limit):
    n = x.shape[0]
    cin = wdw.shape[-1]
    cout = wpw.shape[-1]
    th = _pick_rows(hp, wp, cin, cout, x.dtype.itemsize,
                    jnp.dtype(out_dtype).itemsize, jnp.dtype(tap_dtype).itemsize,
                    pool, budget)
    nt = pl.cdiv(hp, th)

    if pool:
        # x: (N, 2*Hp, wp, 2*cin) -- pre-pool rows with each W pixel pair merged
        # into the lane dim (free contiguous reshape done HBM-side).
        body_spec = pl.BlockSpec((1, 2 * th, wp, 2 * cin), lambda i, t: (i, t, 0, 0))
        top_spec = pl.BlockSpec((1, 2, wp, 2 * cin),
                                lambda i, t: (i, jnp.maximum(t * th - 1, 0), 0, 0))
        bot_spec = pl.BlockSpec((1, 2, wp, 2 * cin),
                                lambda i, t: (i, jnp.minimum(t * th + th, hp - 1), 0, 0))
    else:
        # x: (N, Hp, wp, cin)
        body_spec = pl.BlockSpec((1, th, wp, cin), lambda i, t: (i, t, 0, 0))
        top_spec = pl.BlockSpec((1, 1, wp, cin),
                                lambda i, t: (i, jnp.maximum(t * th - 1, 0), 0, 0))
        bot_spec = pl.BlockSpec((1, 1, wp, cin),
                                lambda i, t: (i, jnp.minimum(t * th + th, hp - 1), 0, 0))

    def kernel(xb_ref, xt_ref, xbot_ref, wdw_ref, b1_ref, wpw_ref, b2_ref, o_ref):
        t = pl.program_id(1)

        def prep(v):
            v = v.astype(tap_dtype)
            if pool:
                v = jnp.maximum(v[..., :cin], v[..., cin:])     # W-max: 128-aligned lane slices
                v = v.reshape(v.shape[0] // 2, 2, wp, cin)      # free leading-dim split
                v = jnp.maximum(v[:, 0], v[:, 1])               # H-max
            return v

        body = prep(xb_ref[0])                                   # (th, wp, cin)
        top = prep(xt_ref[0])                                    # (1, wp, cin)
        bot = prep(xbot_ref[0])                                  # (1, wp, cin)

        top = jnp.where(t == 0, jnp.zeros_like(top), top)                 # image top border
        bot = jnp.where(t * th + th >= hp, jnp.zeros_like(bot), bot)      # image bottom border
        if hp % th != 0:                                                  # partial last tile
            row = t * th + lax.broadcasted_iota(jnp.int32, (th, 1, 1), 0)
            body = jnp.where(row < hp, body, jnp.zeros_like(body))

        # Depthwise 3x3.  The H/W halo is assembled once in VMEM (copy rides the
        # vld/vst slots, not the VALU bottleneck); taps multiply in tap_dtype
        # (bf16 on v6e/v7x) and accumulate in f32; kx (sublane shift -> XLU) is
        # hoisted so only 3 relayouts are needed.  BN scale is folded into wdw.
        wdw_v = wdw_ref[...].astype(tap_dtype)                   # hoisted once (review)
        xh = jnp.concatenate([top, body, bot], axis=0)           # (th+2, wp, cin)
        zc = jnp.zeros((th + 2, 1, cin), tap_dtype)
        xh = jnp.concatenate([zc, xh, zc], axis=1)               # (th+2, wp+2, cin)

        acc = jnp.zeros((th, wp, cin), jnp.float32)
        for kx in range(3):
            xs = xh[:, kx:kx + wp, :]
            for ky in range(3):
                acc = acc + xs[ky:ky + th] * wdw_v[ky, kx]

        h = jnp.maximum(acc + b1_ref[...], 0.0)                  # folded BN bias + ReLU

        # Pointwise 1x1 over all tile pixels as one lane-dense MXU matmul.
        # wp is a multiple of 8 so this reshape is layout preserving; operands
        # are bf16 by default with f32 accumulation.
        hm = h.astype(wpw_ref.dtype).reshape(th * wp, cin)
        y = jnp.dot(hm, wpw_ref[...], preferred_element_type=jnp.float32)
        y = jnp.maximum(y + b2_ref[...], 0.0)                    # folded BN bias + ReLU
        y = y.reshape(th, wp, cout)

        if mask_w_out:
            # Zero the padded W columns so the next stage's W halo reads zeros.
            col = lax.broadcasted_iota(jnp.int32, (1, wp, 1), 1)
            y = jnp.where(col < wp_valid, y, jnp.zeros_like(y))

        o_ref[0] = y.astype(o_ref.dtype)

    flops = n * hp * wp * (2 * cin * cout + 18 * cin)
    bytes_accessed = (x.size * x.dtype.itemsize
                      + n * hp * wp * cout * jnp.dtype(out_dtype).itemsize
                      + (9 * cin + cin * cout) * jnp.dtype(tap_dtype).itemsize
                      + (cin + cout) * 4)

    # NOTE: the constant-index weight blocks are double-buffered by default; on
    # v7x (64 MiB VMEM) they could additionally use pipeline_mode=pl.Buffered(1).
    return pl.pallas_call(
        kernel,
        out_shape=jax.ShapeDtypeStruct((n, hp, wp, cout), out_dtype),
        grid=(n, nt),
        in_specs=[
            body_spec, top_spec, bot_spec,
            pl.BlockSpec((3, 3, cin), lambda i, t: (0, 0, 0)),
            pl.BlockSpec((1, cin), lambda i, t: (0, 0)),
            pl.BlockSpec((cin, cout), lambda i, t: (0, 0)),
            pl.BlockSpec((1, cout), lambda i, t: (0, 0)),
        ],
        out_specs=pl.BlockSpec((1, th, wp, cout), lambda i, t: (i, t, 0, 0)),
        compiler_params=pltpu.CompilerParams(
            dimension_semantics=("parallel", "parallel"),
            vmem_limit_bytes=vmem_limit),
        cost_estimate=pl.CostEstimate(flops=int(flops), transcendentals=0,
                                      bytes_accessed=int(bytes_accessed)),
    )(x, x, x, wdw, b1, wpw, b2)


# ----------------------------------------------------------------------------
# Module forward
# ----------------------------------------------------------------------------
def down_forward(x_nchw, p, *, storage_dtype=jnp.float32,
                 tap_dtype=jnp.bfloat16, mxu_dtype=jnp.bfloat16):
    """Forward of `down` (inference-mode BN folded into the convs).

    tap_dtype : depthwise-tap operand dtype (accumulation stays f32).
                bf16 recommended on v6e/v7x (bf16 VALU); use f32 on v5e.
    mxu_dtype : 1x1-conv MXU operand dtype (accumulation stays f32).  bf16
                recommended on all generations (f32 MXU is multi-pass emulated).
    storage_dtype : inter-stage activation dtype in HBM (bf16 halves HBM traffic).
    """
    # TODO(synk): training-mode BatchNorm (batch statistics) is not reproduced.
    n, cin, h, w = x_nchw.shape
    cout = p["pw1_w"].shape[1]
    cin_p = _round_up(cin, _LANE)
    cout_p = _round_up(cout, _LANE)

    he, we = (h // 2) * 2, (w // 2) * 2          # MaxPool2d(2) floors odd sizes
    hp = he // 2
    wp_valid = we // 2
    wp = _round_up(max(wp_valid, 8), 8)          # sublane-friendly pooled width

    budget, vmem_limit = _vmem_params()

    def pad_c(a, tgt):
        d = tgt - a.shape[-1]
        return a if d == 0 else jnp.pad(a, [(0, 0)] * (a.ndim - 1) + [(0, d)])

    # Fold the BN scales into the conv weights (review item); keep biases.
    wdw1 = pad_c(p["dw1_w"] * p["s1a"], cin_p).astype(tap_dtype)
    b1a = pad_c(p["b1a"], cin_p).reshape(1, cin_p).astype(jnp.float32)
    wpw1 = jnp.pad(p["pw1_w"] * p["s1b"][None, :],
                   ((0, cin_p - cin), (0, cout_p - cout))).astype(mxu_dtype)
    b1b = pad_c(p["b1b"], cout_p).reshape(1, cout_p).astype(jnp.float32)
    wdw2 = pad_c(p["dw2_w"] * p["s2a"], cout_p).astype(tap_dtype)
    b2a = pad_c(p["b2a"], cout_p).reshape(1, cout_p).astype(jnp.float32)
    wpw2 = jnp.pad(p["pw2_w"] * p["s2b"][None, :],
                   ((0, cout_p - cout), (0, cout_p - cout))).astype(mxu_dtype)
    b2b = pad_c(p["b2b"], cout_p).reshape(1, cout_p).astype(jnp.float32)

    # Layout glue (one XLA pass): NCHW -> NHWC, crop to even H/W, zero-pad W (to a
    # multiple of 16 pre-pool) and C (to a lane multiple), cast, then a free
    # contiguous reshape folding each W pixel pair into the lane dim so the fused
    # max-pool needs no strided / sublane-splitting access in-kernel.
    x = jnp.transpose(x_nchw, (0, 2, 3, 1))[:, :he, :we, :]
    x = jnp.pad(x, ((0, 0), (0, 0), (0, 2 * wp - we), (0, cin_p - cin)))
    x = x.astype(storage_dtype).reshape(n, he, wp, 2 * cin_p)

    # Stage 1: fused [maxpool 2x2 -> dw3x3+BN+ReLU -> 1x1+BN+ReLU].
    y = _conv_stage(x, wdw1, b1a, wpw1, b1b, pool=True, hp=hp, wp=wp,
                    wp_valid=wp_valid, mask_w_out=(wp != wp_valid),
                    tap_dtype=tap_dtype, out_dtype=storage_dtype,
                    budget=budget, vmem_limit=vmem_limit)
    # Stage 2: fused [dw3x3+BN+ReLU -> 1x1+BN+ReLU], reads stage-1 output directly.
    y = _conv_stage(y, wdw2, b2a, wpw2, b2b, pool=False, hp=hp, wp=wp,
                    wp_valid=wp_valid, mask_w_out=False,
                    tap_dtype=tap_dtype, out_dtype=x_nchw.dtype,
                    budget=budget, vmem_limit=vmem_limit)

    y = y[:, :, :wp_valid, :cout]
    return jnp.transpose(y, (0, 3, 1, 2))        # NHWC -> NCHW


# ----------------------------------------------------------------------------
# Deterministic parameter init (shapes follow the PyTorch module __init__)
# ----------------------------------------------------------------------------
def _bn_fold(kg, kb, c, eps=1e-5):
    gamma = jax.random.uniform(kg, (c,), jnp.float32, 0.5, 1.5)
    beta = jax.random.normal(kb, (c,), jnp.float32) * 0.1
    mean = jax.random.normal(jax.random.fold_in(kg, 1), (c,), jnp.float32) * 0.1
    var = jax.random.uniform(jax.random.fold_in(kb, 1), (c,), jnp.float32, 0.5, 1.5)
    s = gamma / jnp.sqrt(var + eps)
    return s, beta - mean * s


def init_params(key, in_ch, out_ch):
    ks = jax.random.split(key, 12)
    p = {}
    p["dw1_w"] = jax.random.normal(ks[0], (3, 3, in_ch), jnp.float32) * 0.3
    p["s1a"], p["b1a"] = _bn_fold(ks[1], ks[2], in_ch)
    p["pw1_w"] = jax.random.normal(ks[3], (in_ch, out_ch), jnp.float32) * 0.3
    p["s1b"], p["b1b"] = _bn_fold(ks[4], ks[5], out_ch)
    p["dw2_w"] = jax.random.normal(ks[6], (3, 3, out_ch), jnp.float32) * 0.3
    p["s2a"], p["b2a"] = _bn_fold(ks[7], ks[8], out_ch)
    p["pw2_w"] = jax.random.normal(ks[9], (out_ch, out_ch), jnp.float32) * 0.3
    p["s2b"], p["b2b"] = _bn_fold(ks[10], ks[11], out_ch)
    return p


# ----------------------------------------------------------------------------
# Pure-JAX reference (same inference-mode folded-BN semantics)
# ----------------------------------------------------------------------------
def ref_forward(x_nchw, p):
    x = jnp.transpose(x_nchw, (0, 2, 3, 1))
    x = lax.reduce_window(x, -jnp.inf, lax.max, (1, 2, 2, 1), (1, 2, 2, 1), "VALID")

    def dw(x, w, s, b):
        y = lax.conv_general_dilated(
            x, w[:, :, None, :], (1, 1), "SAME",
            dimension_numbers=("NHWC", "HWIO", "NHWC"),
            feature_group_count=x.shape[-1],
            precision=lax.Precision.HIGHEST)
        return jnp.maximum(y * s + b, 0.0)

    def pw(x, w, s, b):
        y = jnp.einsum("nhwi,io->nhwo", x, w, precision=lax.Precision.HIGHEST)
        return jnp.maximum(y * s + b, 0.0)

    x = dw(x, p["dw1_w"], p["s1a"], p["b1a"])
    x = pw(x, p["pw1_w"], p["s1b"], p["b1b"])
    x = dw(x, p["dw2_w"], p["s2a"], p["b2a"])
    x = pw(x, p["pw2_w"], p["s2b"], p["b2b"])
    return jnp.transpose(x, (0, 3, 1, 2))


if __name__ == "__main__":
    key = jax.random.PRNGKey(0)
    k_x, k_p = jax.random.split(key)

    N, in_ch, out_ch, HW = 2, 4, 8, 16
    x = jax.random.normal(k_x, (N, in_ch, HW, HW), jnp.float32)
    params = init_params(k_p, in_ch, out_ch)

    y_ref = ref_forward(x, params)
    scale = max(1.0, float(jnp.max(jnp.abs(y_ref))))

    # 1) Full-f32 path: tight check of the kernel logic.
    y32 = jax.block_until_ready(
        down_forward(x, params, tap_dtype=jnp.float32, mxu_dtype=jnp.float32))
    assert y32.shape == (N, out_ch, HW // 2, HW // 2), y32.shape
    err32 = float(jnp.max(jnp.abs(y32 - y_ref)))
    if err32 > 1e-3 * scale:
        raise AssertionError(f"f32 path mismatch vs reference, max abs err = {err32}")

    # 2) Default perf path (bf16 taps + bf16 MXU operands, f32 accumulation):
    #    explicit, pre-derived bf16 error bound (not a widened f32 tolerance).
    ybf = jax.block_until_ready(down_forward(x, params))
    assert ybf.shape == y32.shape
    errbf = float(jnp.max(jnp.abs(ybf - y_ref)))
    if errbf > 8e-2 * scale:
        raise AssertionError(f"bf16-compute path out of bound, max abs err = {errbf}")

    # 3) bf16 storage (HBM-traffic option on v6e/v7x): run + sanity checks.
    ysto = jax.block_until_ready(
        down_forward(x, params, storage_dtype=jnp.bfloat16))
    assert ysto.shape == y32.shape
    assert bool(jnp.all(jnp.isfinite(ysto.astype(jnp.float32))))

    print("KERNEL_OK")
</pallas_src>

<mosaic_0001>
module attributes {stable_mosaic.version = 11 : i64} {
  func.func @kernel(%arg0: i32, %arg1: i32, %arg2: memref<1x16x8x256xf32, #tpu.memory_space<vmem>>, %arg3: memref<1x2x8x256xf32, #tpu.memory_space<vmem>>, %arg4: memref<1x2x8x256xf32, #tpu.memory_space<vmem>>, %arg5: memref<3x3x128xf32, #tpu.memory_space<vmem>>, %arg6: memref<1x128xf32, #tpu.memory_space<vmem>>, %arg7: memref<128x128xf32, #tpu.memory_space<vmem>>, %arg8: memref<1x128xf32, #tpu.memory_space<vmem>>, %arg9: memref<1x8x8x128xf32, #tpu.memory_space<vmem>>) attributes {dimension_semantics = [#tpu.dimension_semantics<parallel>, #tpu.dimension_semantics<parallel>], iteration_bounds = array<i64: 2, 1>, scalar_prefetch = 0 : i64, scratch_operands = 0 : i64, tpu.core_type = #tpu.core_type<tc>, window_params = [{transform_indices = @transform_0, window_bounds = array<i64: 1, 16, 8, 256>}, {transform_indices = @transform_1, window_bounds = array<i64: 1, 2, 8, 256>}, {transform_indices = @transform_2, window_bounds = array<i64: 1, 2, 8, 256>}, {pipeline_mode = #tpu.pipeline_mode<synchronous>, transform_indices = @transform_3, window_bounds = array<i64: 3, 3, 128>}, {pipeline_mode = #tpu.pipeline_mode<synchronous>, transform_indices = @transform_4, window_bounds = array<i64: 1, 128>}, {pipeline_mode = #tpu.pipeline_mode<synchronous>, transform_indices = @transform_5, window_bounds = array<i64: 128, 128>}, {pipeline_mode = #tpu.pipeline_mode<synchronous>, transform_indices = @transform_6, window_bounds = array<i64: 1, 128>}, {transform_indices = @transform_7, window_bounds = array<i64: 1, 8, 8, 128>}]} {
    %c0 = arith.constant 0 : index
    %c0_0 = arith.constant 0 : index
    %c0_1 = arith.constant 0 : index
    %c0_2 = arith.constant 0 : index
    %0 = vector.load %arg2[%c0, %c0_0, %c0_1, %c0_2] : memref<1x16x8x256xf32, #tpu.memory_space<vmem>>, vector<1x16x8x256xf32>
    %1 = vector.shape_cast %0 : vector<1x16x8x256xf32> to vector<16x8x256xf32>
    %2 = vector.extract_strided_slice %1 {offsets = [0, 0, 0], sizes = [16, 8, 128], strides = [1, 1, 1]} : vector<16x8x256xf32> to vector<16x8x128xf32>
    %3 = vector.extract_strided_slice %1 {offsets = [0, 0, 128], sizes = [16, 8, 128], strides = [1, 1, 1]} : vector<16x8x256xf32> to vector<16x8x128xf32>
    %4 = arith.maximumf %2, %3 : vector<16x8x128xf32>
    %5 = vector.shape_cast %4 : vector<16x8x128xf32> to vector<8x2x8x128xf32>
    %6 = vector.extract_strided_slice %5 {offsets = [0, 0, 0, 0], sizes = [8, 1, 8, 128], strides = [1, 1, 1, 1]} : vector<8x2x8x128xf32> to vector<8x1x8x128xf32>
    %7 = vector.shape_cast %6 : vector<8x1x8x128xf32> to vector<8x8x128xf32>
    %8 = vector.extract_strided_slice %5 {offsets = [0, 1, 0, 0], sizes = [8, 1, 8, 128], strides = [1, 1, 1, 1]} : vector<8x2x8x128xf32> to vector<8x1x8x128xf32>
    %9 = vector.shape_cast %8 : vector<8x1x8x128xf32> to vector<8x8x128xf32>
    %10 = arith.maximumf %7, %9 : vector<8x8x128xf32>
    %c0_3 = arith.constant 0 : index
    %c0_4 = arith.constant 0 : index
    %c0_5 = arith.constant 0 : index
    %c0_6 = arith.constant 0 : index
    %11 = vector.load %arg3[%c0_3, %c0_4, %c0_5, %c0_6] : memref<1x2x8x256xf32, #tpu.memory_space<vmem>>, vector<1x2x8x256xf32>
    %12 = vector.shape_cast %11 : vector<1x2x8x256xf32> to vector<2x8x256xf32>
    %13 = vector.extract_strided_slice %12 {offsets = [0, 0, 0], sizes = [2, 8, 128], strides = [1, 1, 1]} : vector<2x8x256xf32> to vector<2x8x128xf32>
    %14 = vector.extract_strided_slice %12 {offsets = [0, 0, 128], sizes = [2, 8, 128], strides = [1, 1, 1]} : vector<2x8x256xf32> to vector<2x8x128xf32>
    %15 = arith.maximumf %13, %14 : vector<2x8x128xf32>
    %16 = vector.shape_cast %15 : vector<2x8x128xf32> to vector<1x2x8x128xf32>
    %17 = vector.extract_strided_slice %16 {offsets = [0, 0, 0, 0], sizes = [1, 1, 8, 128], strides = [1, 1, 1, 1]} : vector<1x2x8x128xf32> to vector<1x1x8x128xf32>
    %18 = vector.shape_cast %17 : vector<1x1x8x128xf32> to vector<1x8x128xf32>
    %19 = vector.extract_strided_slice %16 {offsets = [0, 1, 0, 0], sizes = [1, 1, 8, 128], strides = [1, 1, 1, 1]} : vector<1x2x8x128xf32> to vector<1x1x8x128xf32>
    %20 = vector.shape_cast %19 : vector<1x1x8x128xf32> to vector<1x8x128xf32>
    %21 = arith.maximumf %18, %20 : vector<1x8x128xf32>
    %c0_7 = arith.constant 0 : index
    %c0_8 = arith.constant 0 : index
    %c0_9 = arith.constant 0 : index
    %c0_10 = arith.constant 0 : index
    %22 = vector.load %arg4[%c0_7, %c0_8, %c0_9, %c0_10] : memref<1x2x8x256xf32, #tpu.memory_space<vmem>>, vector<1x2x8x256xf32>
    %23 = vector.shape_cast %22 : vector<1x2x8x256xf32> to vector<2x8x256xf32>
    %24 = vector.extract_strided_slice %23 {offsets = [0, 0, 0], sizes = [2, 8, 128], strides = [1, 1, 1]} : vector<2x8x256xf32> to vector<2x8x128xf32>
    %25 = vector.extract_strided_slice %23 {offsets = [0, 0, 128], sizes = [2, 8, 128], strides = [1, 1, 1]} : vector<2x8x256xf32> to vector<2x8x128xf32>
    %26 = arith.maximumf %24, %25 : vector<2x8x128xf32>
    %27 = vector.shape_cast %26 : vector<2x8x128xf32> to vector<1x2x8x128xf32>
    %28 = vector.extract_strided_slice %27 {offsets = [0, 0, 0, 0], sizes = [1, 1, 8, 128], strides = [1, 1, 1, 1]} : vector<1x2x8x128xf32> to vector<1x1x8x128xf32>
    %29 = vector.shape_cast %28 : vector<1x1x8x128xf32> to vector<1x8x128xf32>
    %30 = vector.extract_strided_slice %27 {offsets = [0, 1, 0, 0], sizes = [1, 1, 8, 128], strides = [1, 1, 1, 1]} : vector<1x2x8x128xf32> to vector<1x1x8x128xf32>
    %31 = vector.shape_cast %30 : vector<1x1x8x128xf32> to vector<1x8x128xf32>
    %32 = arith.maximumf %29, %31 : vector<1x8x128xf32>
    %c0_i32 = arith.constant 0 : i32
    %33 = arith.cmpi eq, %arg1, %c0_i32 : i32
    %cst = arith.constant 0.000000e+00 : f32
    %34 = vector.broadcast %cst : f32 to vector<1x8x128xf32>
    %35 = arith.select %33, %34, %21 : vector<1x8x128xf32>
    %c8_i32 = arith.constant 8 : i32
    %36 = arith.muli %arg1, %c8_i32 : i32
    %c8_i32_11 = arith.constant 8 : i32
    %37 = arith.addi %36, %c8_i32_11 : i32
    %c8_i32_12 = arith.constant 8 : i32
    %38 = arith.cmpi sge, %37, %c8_i32_12 : i32
    %cst_13 = arith.constant 0.000000e+00 : f32
    %39 = vector.broadcast %cst_13 : f32 to vector<1x8x128xf32>
    %40 = arith.select %38, %39, %32 : vector<1x8x128xf32>
    %c0_14 = arith.constant 0 : index
    %c0_15 = arith.constant 0 : index
    %c0_16 = arith.constant 0 : index
    %41 = vector.load %arg5[%c0_14, %c0_15, %c0_16] : memref<3x3x128xf32, #tpu.memory_space<vmem>>, vector<3x3x128xf32>
    %42 = tpu.concatenate %35, %10, %40 in 0 : vector<1x8x128xf32>, vector<8x8x128xf32>, vector<1x8x128xf32> -> vector<10x8x128xf32>
    %cst_17 = arith.constant 0.000000e+00 : f32
    %43 = vector.broadcast %cst_17 : f32 to vector<10x1x128xf32>
    %44 = tpu.concatenate %43, %42, %43 in 1 : vector<10x1x128xf32>, vector<10x8x128xf32>, vector<10x1x128xf32> -> vector<10x10x128xf32>
    %cst_18 = arith.constant 0.000000e+00 : f32
    %45 = vector.broadcast %cst_18 : f32 to vector<8x8x128xf32>
    %46 = vector.extract_strided_slice %44 {offsets = [0, 0, 0], sizes = [10, 8, 128], strides = [1, 1, 1]} : vector<10x10x128xf32> to vector<10x8x128xf32>
    %47 = vector.extract_strided_slice %46 {offsets = [0, 0, 0], sizes = [8, 8, 128], strides = [1, 1, 1]} : vector<10x8x128xf32> to vector<8x8x128xf32>
    %48 = vector.extract_strided_slice %41 {offsets = [0, 0, 0], sizes = [1, 1, 128], strides = [1, 1, 1]} : vector<3x3x128xf32> to vector<1x1x128xf32>
    %49 = vector.shape_cast %48 : vector<1x1x128xf32> to vector<128xf32>
    %50 = vector.shape_cast %49 : vector<128xf32> to vector<1x1x128xf32>
    %51 = vector.broadcast %50 : vector<1x1x128xf32> to vector<8x8x128xf32>
    %52 = arith.mulf %47, %51 : vector<8x8x128xf32>
    %53 = arith.addf %45, %52 : vector<8x8x128xf32>
    %54 = vector.extract_strided_slice %46 {offsets = [1, 0, 0], sizes = [8, 8, 128], strides = [1, 1, 1]} : vector<10x8x128xf32> to vector<8x8x128xf32>
    %55 = vector.extract_strided_slice %41 {offsets = [1, 0, 0], sizes = [1, 1, 128], strides = [1, 1, 1]} : vector<3x3x128xf32> to vector<1x1x128xf32>
    %56 = vector.shape_cast %55 : vector<1x1x128xf32> to vector<128xf32>
    %57 = vector.shape_cast %56 : vector<128xf32> to vector<1x1x128xf32>
    %58 = vector.broadcast %57 : vector<1x1x128xf32> to vector<8x8x128xf32>
    %59 = arith.mulf %54, %58 : vector<8x8x128xf32>
    %60 = arith.addf %53, %59 : vector<8x8x128xf32>
    %61 = vector.extract_strided_slice %46 {offsets = [2, 0, 0], sizes = [8, 8, 128], strides = [1, 1, 1]} : vector<10x8x128xf32> to vector<8x8x128xf32>
    %62 = vector.extract_strided_slice %41 {offsets = [2, 0, 0], sizes = [1, 1, 128], strides = [1, 1, 1]} : vector<3x3x128xf32> to vector<1x1x128xf32>
    %63 = vector.shape_cast %62 : vector<1x1x128xf32> to vector<128xf32>
    %64 = vector.shape_cast %63 : vector<128xf32> to vector<1x1x128xf32>
    %65 = vector.broadcast %64 : vector<1x1x128xf32> to vector<8x8x128xf32>
    %66 = arith.mulf %61, %65 : vector<8x8x128xf32>
    %67 = arith.addf %60, %66 : vector<8x8x128xf32>
    %68 = vector.extract_strided_slice %44 {offsets = [0, 1, 0], sizes = [10, 8, 128], strides = [1, 1, 1]} : vector<10x10x128xf32> to vector<10x8x128xf32>
    %69 = vector.extract_strided_slice %68 {offsets = [0, 0, 0], sizes = [8, 8, 128], strides = [1, 1, 1]} : vector<10x8x128xf32> to vector<8x8x128xf32>
    %70 = vector.extract_strided_slice %41 {offsets = [0, 1, 0], sizes = [1, 1, 128], strides = [1, 1, 1]} : vector<3x3x128xf32> to vector<1x1x128xf32>
    %71 = vector.shape_cast %70 : vector<1x1x128xf32> to vector<128xf32>
    %72 = vector.shape_cast %71 : vector<128xf32> to vector<1x1x128xf32>
    %73 = vector.broadcast %72 : vector<1x1x128xf32> to vector<8x8x128xf32>
    %74 = arith.mulf %69, %73 : vector<8x8x128xf32>
    %75 = arith.addf %67, %74 : vector<8x8x128xf32>
    %76 = vector.extract_strided_slice %68 {offsets = [1, 0, 0], sizes = [8, 8, 128], strides = [1, 1, 1]} : vector<10x8x128xf32> to vector<8x8x128xf32>
    %77 = vector.extract_strided_slice %41 {offsets = [1, 1, 0], sizes = [1, 1, 128], strides = [1, 1, 1]} : vector<3x3x128xf32> to vector<1x1x128xf32>
    %78 = vector.shape_cast %77 : vector<1x1x128xf32> to vector<128xf32>
    %79 = vector.shape_cast %78 : vector<128xf32> to vector<1x1x128xf32>
    %80 = vector.broadcast %79 : vector<1x1x128xf32> to vector<8x8x128xf32>
    %81 = arith.mulf %76, %80 : vector<8x8x128xf32>
    %82 = arith.addf %75, %81 : vector<8x8x128xf32>
    %83 = vector.extract_strided_slice %68 {offsets = [2, 0, 0], sizes = [8, 8, 128], strides = [1, 1, 1]} : vector<10x8x128xf32> to vector<8x8x128xf32>
    %84 = vector.extract_strided_slice %41 {offsets = [2, 1, 0], sizes = [1, 1, 128], strides = [1, 1, 1]} : vector<3x3x128xf32> to vector<1x1x128xf32>
    %85 = vector.shape_cast %84 : vector<1x1x128xf32> to vector<128xf32>
    %86 = vector.shape_cast %85 : vector<128xf32> to vector<1x1x128xf32>
    %87 = vector.broadcast %86 : vector<1x1x128xf32> to vector<8x8x128xf32>
    %88 = arith.mulf %83, %87 : vector<8x8x128xf32>
    %89 = arith.addf %82, %88 : vector<8x8x128xf32>
    %90 = vector.extract_strided_slice %44 {offsets = [0, 2, 0], sizes = [10, 8, 128], strides = [1, 1, 1]} : vector<10x10x128xf32> to vector<10x8x128xf32>
    %91 = vector.extract_strided_slice %90 {offsets = [0, 0, 0], sizes = [8, 8, 128], strides = [1, 1, 1]} : vector<10x8x128xf32> to vector<8x8x128xf32>
    %92 = vector.extract_strided_slice %41 {offsets = [0, 2, 0], sizes = [1, 1, 128], strides = [1, 1, 1]} : vector<3x3x128xf32> to vector<1x1x128xf32>
    %93 = vector.shape_cast %92 : vector<1x1x128xf32> to vector<128xf32>
    %94 = vector.shape_cast %93 : vector<128xf32> to vector<1x1x128xf32>
    %95 = vector.broadcast %94 : vector<1x1x128xf32> to vector<8x8x128xf32>
    %96 = arith.mulf %91, %95 : vector<8x8x128xf32>
    %97 = arith.addf %89, %96 : vector<8x8x128xf32>
    %98 = vector.extract_strided_slice %90 {offsets = [1, 0, 0], sizes = [8, 8, 128], strides = [1, 1, 1]} : vector<10x8x128xf32> to vector<8x8x128xf32>
    %99 = vector.extract_strided_slice %41 {offsets = [1, 2, 0], sizes = [1, 1, 128], strides = [1, 1, 1]} : vector<3x3x128xf32> to vector<1x1x128xf32>
    %100 = vector.shape_cast %99 : vector<1x1x128xf32> to vector<128xf32>
    %101 = vector.shape_cast %100 : vector<128xf32> to vector<1x1x128xf32>
    %102 = vector.broadcast %101 : vector<1x1x128xf32> to vector<8x8x128xf32>
    %103 = arith.mulf %98, %102 : vector<8x8x128xf32>
    %104 = arith.addf %97, %103 : vector<8x8x128xf32>
    %105 = vector.extract_strided_slice %90 {offsets = [2, 0, 0], sizes = [8, 8, 128], strides = [1, 1, 1]} : vector<10x8x128xf32> to vector<8x8x128xf32>
    %106 = vector.extract_strided_slice %41 {offsets = [2, 2, 0], sizes = [1, 1, 128], strides = [1, 1, 1]} : vector<3x3x128xf32> to vector<1x1x128xf32>
    %107 = vector.shape_cast %106 : vector<1x1x128xf32> to vector<128xf32>
    %108 = vector.shape_cast %107 : vector<128xf32> to vector<1x1x128xf32>
    %109 = vector.broadcast %108 : vector<1x1x128xf32> to vector<8x8x128xf32>
    %110 = arith.mulf %105, %109 : vector<8x8x128xf32>
    %111 = arith.addf %104, %110 : vector<8x8x128xf32>
    %c0_19 = arith.constant 0 : index
    %c0_20 = arith.constant 0 : index
    %112 = vector.load %arg6[%c0_19, %c0_20] : memref<1x128xf32, #tpu.memory_space<vmem>>, vector<1x128xf32>
    %113 = vector.shape_cast %112 : vector<1x128xf32> to vector<1x1x128xf32>
    %114 = vector.broadcast %113 : vector<1x1x128xf32> to vector<8x8x128xf32>
    %115 = arith.addf %111, %114 : vector<8x8x128xf32>
    %cst_21 = arith.constant 0.000000e+00 : f32
    %116 = vector.broadcast %cst_21 : f32 to vector<8x8x128xf32>
    %117 = arith.maximumf %115, %116 : vector<8x8x128xf32>
    %118 = vector.shape_cast %117 : vector<8x8x128xf32> to vector<64x128xf32>
    %c0_22 = arith.constant 0 : index
    %c0_23 = arith.constant 0 : index
    %119 = vector.load %arg7[%c0_22, %c0_23] : memref<128x128xf32, #tpu.memory_space<vmem>>, vector<128x128xf32>
    %cst_24 = arith.constant dense<0.000000e+00> : vector<64x128xf32>
    %120 = tpu.matmul %118, %119, %cst_24 {dimension_numbers = #tpu.dot_dimension_numbers<[1], [0], [0], [1], [0, 0, 1, 1], [], []>} : vector<64x128xf32>, vector<128x128xf32>, vector<64x128xf32> -> vector<64x128xf32>
    %c0_25 = arith.constant 0 : index
    %c0_26 = arith.constant 0 : index
    %121 = vector.load %arg8[%c0_25, %c0_26] : memref<1x128xf32, #tpu.memory_space<vmem>>, vector<1x128xf32>
    %122 = vector.broadcast %121 : vector<1x128xf32> to vector<64x128xf32>
    %123 = arith.addf %120, %122 : vector<64x128xf32>
    %cst_27 = arith.constant 0.000000e+00 : f32
    %124 = vector.broadcast %cst_27 : f32 to vector<64x128xf32>
    %125 = arith.maximumf %123, %124 : vector<64x128xf32>
    %126 = vector.shape_cast %125 : vector<64x128xf32> to vector<8x8x128xf32>
    %c0_28 = arith.constant 0 : index
    %c0_29 = arith.constant 0 : index
    %c0_30 = arith.constant 0 : index
    %c0_31 = arith.constant 0 : index
    %127 = vector.load %arg9[%c0_28, %c0_29, %c0_30, %c0_31] : memref<1x8x8x128xf32, #tpu.memory_space<vmem>>, vector<1x8x8x128xf32>
    %128 = vector.shape_cast %127 : vector<1x8x8x128xf32> to vector<8x8x128xf32>
    %129 = vector.shape_cast %126 : vector<8x8x128xf32> to vector<1x8x8x128xf32>
    tpu.vector_store %arg9[%c0_28, %c0_29, %c0_30, %c0_31], %129 {strides = array<i32>} : memref<1x8x8x128xf32, #tpu.memory_space<vmem>>, vector<1x8x8x128xf32>,
    return
  }
  func.func @transform_0(%arg0: i32, %arg1: i32) -> (i32, i32, i32, i32) {
    %c0_i32 = arith.constant 0 : i32
    %c0_i32_0 = arith.constant 0 : i32
    %c0_i32_1 = arith.constant 0 : i32
    return %arg0, %arg1, %c0_i32, %c0_i32_0 : i32, i32, i32, i32
  }
  func.func @transform_1(%arg0: i32, %arg1: i32) -> (i32, i32, i32, i32) {
    %c8_i32 = arith.constant 8 : i32
    %0 = arith.muli %arg1, %c8_i32 : i32
    %c1_i32 = arith.constant 1 : i32
    %1 = arith.subi %0, %c1_i32 : i32
    %c0_i32 = arith.constant 0 : i32
    %2 = arith.maxsi %1, %c0_i32 : i32
    %c0_i32_0 = arith.constant 0 : i32
    %c0_i32_1 = arith.constant 0 : i32
    %c0_i32_2 = arith.constant 0 : i32
    return %arg0, %2, %c0_i32_0, %c0_i32_1 : i32, i32, i32, i32
  }
  func.func @transform_2(%arg0: i32, %arg1: i32) -> (i32, i32, i32, i32) {
    %c8_i32 = arith.constant 8 : i32
    %0 = arith.muli %arg1, %c8_i32 : i32
    %c8_i32_0 = arith.constant 8 : i32
    %1 = arith.addi %0, %c8_i32_0 : i32
    %c7_i32 = arith.constant 7 : i32
    %2 = arith.minsi %1, %c7_i32 : i32
    %c0_i32 = arith.constant 0 : i32
    %c0_i32_1 = arith.constant 0 : i32
    %c0_i32_2 = arith.constant 0 : i32
    return %arg0, %2, %c0_i32, %c0_i32_1 : i32, i32, i32, i32
  }
  func.func @transform_3(%arg0: i32, %arg1: i32) -> (i32, i32, i32) {
    %c0_i32 = arith.constant 0 : i32
    %c0_i32_0 = arith.constant 0 : i32
    %c0_i32_1 = arith.constant 0 : i32
    %c0_i32_2 = arith.constant 0 : i32
    return %c0_i32, %c0_i32_0, %c0_i32_1 : i32, i32, i32
  }
  func.func @transform_4(%arg0: i32, %arg1: i32) -> (i32, i32) {
    %c0_i32 = arith.constant 0 : i32
    %c0_i32_0 = arith.constant 0 : i32
    %c0_i32_1 = arith.constant 0 : i32
    return %c0_i32, %c0_i32_0 : i32, i32
  }
  func.func @transform_5(%arg0: i32, %arg1: i32) -> (i32, i32) {
    %c0_i32 = arith.constant 0 : i32
    %c0_i32_0 = arith.constant 0 : i32
    %c0_i32_1 = arith.constant 0 : i32
    return %c0_i32, %c0_i32_0 : i32, i32
  }
  func.func @transform_6(%arg0: i32, %arg1: i32) -> (i32, i32) {
    %c0_i32 = arith.constant 0 : i32
    %c0_i32_0 = arith.constant 0 : i32
    %c0_i32_1 = arith.constant 0 : i32
    return %c0_i32, %c0_i32_0 : i32, i32
  }
  func.func @transform_7(%arg0: i32, %arg1: i32) -> (i32, i32, i32, i32) {
    %c0_i32 = arith.constant 0 : i32
    %c0_i32_0 = arith.constant 0 : i32
    %c0_i32_1 = arith.constant 0 : i32
    return %arg0, %arg1, %c0_i32, %c0_i32_0 : i32, i32, i32, i32
  }
}

</mosaic_0001>

<bundles_post_ra>
// kernel: tpu_custom_call.1
= control target key start
LH: loop header
LB: loop body
LE: loop exit
PB: predicated region body
PF: predicated region fallthrough
CT: control target
= control target key end

     0   :  { %s2799_s0 = inlined_call_operand.hbm [shape: f32[2,16,8,256], index: 0, kind: input, shape index: {}]   ;;  %s2800_s1 = inlined_call_operand.hbm [shape: f32[2,16,8,256], index: 1, kind: input, shape index: {}]   ;;  %s2801_s2 = inlined_call_operand.hbm [shape: f32[2,16,8,256], index: 2, kind: input, shape index: {}]   ;;  %s2802_s3 = inlined_call_operand.hbm [shape: f32[3,3,128], index: 3, kind: input, shape index: {}]   ;;  %s2803_s4 = inlined_call_operand.vmem [shape: f32[1,128], index: 4, kind: input, shape index: {}]   ;;  %s2804_s5 = inlined_call_operand.hbm [shape: f32[128,128], index: 5, kind: input, shape index: {}]   ;;  %s2805_s6 = inlined_call_operand.vmem [shape: f32[1,128], index: 6, kind: input, shape index: {}]   ;;  %s2806_s7 = inlined_call_operand.hbm [shape: f32[2,8,8,128], index: 7, kind: output, shape index: {}]  }
   0x1   :  { %2830 = sst [smem:[#allocation23_spill]] %s2800_s1 }
   0x2   :  { %2831 = sst [smem:[#allocation24_spill]] %s2802_s3 }
   0x3   :  { %2832 = sst [smem:[#allocation25_spill]] %s2806_s7 }
   0x4   :  { %12 = vsyncpa [#allocation3], 0 }
   0x5   :  { %14 = vsyncpa [#allocation3 + $0x1], 0 }
   0x6   :  { %15 = vsyncpa [#allocation6], 0 }
   0x7   :  { %17 = vsyncpa [#allocation6 + $0x1], 0 }
   0x8   :  { %18 = vsyncpa [#allocation9], 0 }
   0x9   :  { %19 = vsyncpa [#allocation4], 0 }
   0xa   :  { %21 = vsyncpa [#allocation4 + $0x1], 0  ;;  %s2006_s24 = smov 0   ;;  %s2008_s25 = smov 0  }
   0xb   :  { %s2010_s26 = smov 0   ;;  %s2012_s27 = smov 0  }
   0xc   :  { %s2014_s28 = smov 0   ;;  %s2016_s29 = smov 0  }
   0xd LB: > { %2833 = sst [smem:[#allocation16_spill]] %s1929_s24  ;;  %s2037_s30 = sadd.s32 4294967295, %s1949_s29   ;;  %s1949_s29 = sphi %s2016_s29, %s27_s29   ;;  %s1945_s28 = sphi %s2014_s28, %s2873_s28   ;;  %s1941_s27 = sphi %s2012_s27, %s2872_s27   ;;  %s1937_s26 = sphi %s2010_s26, %s2871_s26   ;;  %s1933_s25 = sphi %s2008_s25, %s2875_s25   ;;  %s1929_s24 = sphi %s2006_s24, %s2874_s24  }
   0xe   : > { %2834 = sst [smem:[#allocation17_spill]] %s1937_s26  ;;  %s1461_s8 = sadd.s32 4294967294, %s1949_s29  }
   0xf   : > { %2835 = sst [smem:[#allocation18_spill]] %s1945_s28  ;;  %p55_p0 = scmp.ne.s32.totalorder %s1937_s26, %s1933_s25 }
  0x10   : > { %2836 = sst [smem:[#allocation19_spill]] %s1949_s29  ;;  %p56_p1 = scmp.eq.s32.totalorder %s1949_s29, 0 }
  0x11   : > { %p61_p2 = scmp.ne.s32.totalorder %s1933_s25, %s1929_s24  ;;  %p2807_p3 = scmp.eq.s32.totalorder %s2037_s30, 0 }
  0x12   : > { %p2046_p4 = por %p56_p1, %p55_p0  ;;  %p243_p5 = scmp.eq.s32.totalorder %s2037_s30, 1 }
  0x13   : > { %p2053_p6 = por %p2807_p3, %p61_p2  ;;  %p249_p7 = scmp.eq.s32.totalorder %s1461_s8, 1 }
  0x14   : > { %p2057_p8 = por %p243_p5, %p55_p0  ;;  %p1462_p9 = scmp.ge.s32.totalorder %s1949_s29, 1 }
  0x15   : > { %s2838_s10 = scalar_select %p2053_p6, 1, 0 }
  0x16   : > { %s2839_s11 = scalar_select %p2057_p8, 1, 0 }
  0x17   : > { %p2062_p10 = por %p249_p7, %p61_p2  ;;  %p256_p11 = scmp.lt.s32.totalorder %s1949_s29, 3 }
  0x18   : > { %s1951_s14 = smov [#allocation8]   ;;  %s39_s17 = sadd.s32 1, %s1945_s28 }
  0x19   : > { %s2840_s12 = scalar_select %p2062_p10, 1, 0 }
  0x1a   : > { %p2067_p12 = pnand %p1462_p9, %p256_p11  ;;  %s268_s15 = sshll.u32 %s1951_s14, 4  ;;  %s2071_s15 = int_to_ptr.vmem [resolvable:$true] %s268_s15 }
  0x1b   : > { %2841 = sst [smem:[#allocation20_spill]] %s2840_s12  ;;  %p2084_p2 = scmp.ge.s32.totalorder %s39_s17, 2 }
  0x1c   : > { %s2842_s13 = scalar_select %p2067_p12, 1, 0 }
  0x1d   : > { %p1627_p13 = pneg %p2067_p12  ;;  %s2845_s3 = sld [smem:[#allocation24_spill]] }
  0x1f   : > { %p2078_p1 = pnand %p1627_p13, %p2807_p3 }
  0x21   : > { %s2843_s16 = scalar_select %p2078_p1, 1, 0 }
  0x22   : > { %p2817_p7 = pneg %p2078_p1 }
  0x23   : > { %s1713_s22 = scalar_lea.hbm %s2845_s3, 192 }
  0x24   : > { %p1714_p5 = scmp.ne.s32.totalorder %s2845_s3, %s1713_s22  ;;  %p1720_p13 = scmp.lt.u32.totalorder %s1713_s22, %s2845_s3 }
  0x26   : > { %p1716_p9 = pnand %p2817_p7, %p1714_p5 }
  0x28   : > { %p1717_p11 = pneg %p1716_p9 }
  0x2a   : > { %p1722_p0 = pnand %p1720_p13, %p1717_p11 }
  0x2c   : > { %1725 = shalt.err (!%p1722_p0)
}
  0x2d   : > { %s1726_s20 = scalar_lea.vmem %s2071_s15, 192  ;;  %p1734_p6 = scmp.lt.s32.totalorder %s2071_s15, %s2071_s15 }
  0x2e   : > { %p1727_p3 = scmp.ne.s32.totalorder %s2071_s15, %s1726_s20  ;;  %p1735_p5 = scmp.lt.s32.totalorder %s1726_s20, %s1726_s20 }
  0x30   : > { %p1729_p10 = pnand %p1727_p3, %p2817_p7  ;;  %p1736_p9 = por %p1735_p5, %p1734_p6 }
  0x32   : > { %p1730_p8 = pneg %p1729_p10 }
  0x34   : > { %p1737_p12 = pnand %p1736_p9, %p1730_p8 }
  0x36   : > { %1740 = shalt.err (!%p1737_p12)
}
  0x37   : > { %s1952_s18 = smov 64   ;;  %s1953_s21 = smov 4  }
  0x38   : > { %1630 = dma.hbm_to_vmem [thread:$0]  (!%p2078_p1), %s2845_s3, 192, %s2071_s15, [#allocation9], %s1952_s18, %s1952_s18, %s1953_s21  }
  0x39   : > { %s2877_s17 = smov (%p2084_p2, %s39_s17), 0  ;;  %p1650_p3 = scmp.lt.s32.totalorder %s1949_s29, 2 }
  0x3a   : > { %2846 = sst [smem:[#allocation21_spill]] %s2877_s17  ;;  %s2121_s8 = sand.u32 1, %s1937_s26  }
  0x3b   : > { %s43_s14 = ssub.s32 %s1945_s28, %s2877_s17  ;;  %s2126_s20 = sshll.u32 %s1945_s28, 12 }
  0x3c   : > { %p46_p6 = scmp.eq.s32.totalorder %s43_s14, 0  ;;  %p2130_p8 = pnand %p1650_p3, %p2046_p4 }
  0x3d   : > { %s2848_s22 = sadd.s32 1, %s1937_s26  ;;  %s325_s19 = sand.u32 1, %s1949_s29  }
  0x3e   : > { %s2847_s12 = scalar_select %p2130_p8, 1, 0 }
  0x3f   : > { %s2137_s15 = scalar_select %p46_p6, %s1937_s26, %s2848_s22  }
  0x40   : > { %s1469_s18 = sshll.u32 %s2121_s8, 5  ;;  %s2850_s1 = sld [smem:[#allocation23_spill]] }
  0x41   : > { %2849 = sst [smem:[#allocation22_spill]] %s2137_s15  ;;  %s329_s9 = scalar_lea.vmem [#allocation5], %s1469_s18 }
  0x42   : > { %s343_s14 = sshll.u32 %s329_s9, 4  ;;  %s2149_s17 = scalar_lea.vmem [#allocation7], %s1469_s18  ;;  %s2147_s14 = int_to_ptr.vmem [resolvable:$true] %s343_s14 }
  0x43   : > { %s371_s22 = sshll.u32 %s2149_s17, 4  ;;  %s2152_s28 = scalar_lea.sflag [#allocation6], %s325_s19  ;;  %s2187_s22 = int_to_ptr.vmem [resolvable:$true] %s371_s22 }
  0x44   : > { %p2158_p10 = pneg %p2130_p8 }
  0x46   : > { %s2145_s3 = scalar_lea.hbm %s2850_s1, %s2126_s20  ;;  %s1746_s18 = scalar_lea.hbm %s2850_s1, 8192 }
  0x47   : > { %s1741_s15 = scalar_lea.hbm %s2145_s3, 512  ;;  %p1747_p2 = scmp.lt.u32.totalorder %s2145_s3, %s2850_s1 }
  0x48   : > { %p1742_p4 = scmp.ne.s32.totalorder %s2145_s3, %s1741_s15  ;;  %p1748_p11 = scmp.lt.u32.totalorder %s1746_s18, %s1741_s15 }
  0x49   : > { %s2851_s21 = scalar_select %p2158_p10, 1, 0 }
  0x4a   : > { %p1744_p12 = pnand %p2158_p10, %p1742_p4  ;;  %p1749_p13 = por %p1748_p11, %p1747_p2 }
  0x4b   : > { %p1750_p5 = scmp.lt.u32.totalorder %s1741_s15, %s2145_s3 }
  0x4c   : > { %p1745_p0 = pneg %p1744_p12 }
  0x4d   : > { %p1751_p9 = por %p1750_p5, %p1749_p13 }
  0x4f   : > { %p1752_p3 = pnand %p1751_p9, %p1745_p0 }
  0x51   : > { %1755 = shalt.err (!%p1752_p3)
}
  0x52   : > { %s1756_s19 = scalar_lea.vmem %s2147_s14, 512  ;;  %s1954_s23 = smov [#allocation5]  }
  0x53   : > { %p1757_p6 = scmp.ne.s32.totalorder %s2147_s14, %s1756_s19  ;;  %s1761_s9 = sshll.u32 %s1954_s23, 4  ;;  %s1762_s9 = int_to_ptr.vmem [resolvable:$false] %s1761_s9 }
  0x54   : > { %s1763_s26 = scalar_lea.vmem %s1762_s9, 1024  ;;  %p1764_p7 = scmp.lt.s32.totalorder %s2147_s14, %s1762_s9 }
  0x55   : > { %p1759_p4 = pnand %p1757_p6, %p2158_p10  ;;  %p1765_p1 = scmp.lt.s32.totalorder %s1763_s26, %s1756_s19 }
  0x57   : > { %p1760_p12 = pneg %p1759_p4  ;;  %p1766_p2 = por %p1765_p1, %p1764_p7 }
  0x59   : > { %p1767_p11 = pnand %p1766_p2, %p1760_p12 }
  0x5b   : > { %1770 = shalt.err (!%p1767_p11)
}
  0x5c   : > { %s2826_s29 = smov 256   ;;  %s2828_s15 = smov 16  }
  0x5d   : > { %1640 = dma.hbm_to_vmem [thread:$0]  (!%p2130_p8), %s2145_s3, 512, %s2147_s14, %s2152_s28, %s2826_s29, %s2826_s29, %s2828_s15  }
  0x5e   : > { %s1957_s18 = smov [#allocation10]   ;;  %s1771_s26 = scalar_lea.hbm %s2804_s5, 2048 }
  0x5f   : > { %s284_s19 = sshll.u32 %s1957_s18, 4  ;;  %p1772_p1 = scmp.ne.s32.totalorder %s2804_s5, %s1771_s26  ;;  %s285_s19 = int_to_ptr.vmem [resolvable:$true] %s284_s19 }
  0x60   : > { %p2852_p7 = scmp.ne.s32.totalorder %s2843_s16, 0  ;;  %p1778_p9 = scmp.lt.u32.totalorder %s1771_s26, %s2804_s5 }
  0x62   : > { %p2853_p0 = pneg %p2852_p7 }
  0x64   : > { %p1774_p13 = pnand %p1772_p1, %p2853_p0 }
  0x66   : > { %p1775_p5 = pneg %p1774_p13 }
  0x68   : > { %p1780_p3 = pnand %p1778_p9, %p1775_p5 }
  0x6a   : > { %1783 = shalt.err (!%p1780_p3)
}
  0x6b   : > { %s1784_s17 = scalar_lea.vmem %s285_s19, 2048  ;;  %p2854_p4 = pmov %p2853_p0 }
  0x6c   : > { %p1785_p6 = scmp.ne.s32.totalorder %s285_s19, %s1784_s17  ;;  %p1792_p11 = scmp.lt.s32.totalorder %s285_s19, %s285_s19 }
  0x6d   : > { %p1793_p8 = scmp.lt.s32.totalorder %s1784_s17, %s1784_s17 }
  0x6e   : > { %p1787_p12 = pnand %p1785_p6, %p2854_p4 }
  0x6f   : > { %p1794_p10 = por %p1793_p8, %p1792_p11 }
  0x70   : > { %p1788_p2 = pneg %p1787_p12 }
  0x72   : > { %p1795_p0 = pnand %p1794_p10, %p1788_p2 }
  0x74   : > { %1798 = shalt.err (!%p1795_p0)
}
  0x75   : > { %s1958_s1 = smov 128   ;;  %s1959_s7 = smov 8  }
  0x76   : > { %1633 = dma.hbm_to_vmem [thread:$0]  (!%p2852_p7), %s2804_s5, 2048, %s285_s19, [#allocation9], %s1958_s1, %s1958_s1, %s1959_s7  }
  0x77   : > { %s1466_s18 = sshll.u32 %s2121_s8, 8  ;;  %s2214_s26 = scalar_lea.hbm %s2799_s0, %s2126_s20 }
  0x78   : > { %s305_s3 = scalar_lea.vmem [#allocation2], %s1466_s18  ;;  %s1492_s29 = sadd.s32 3584, %s2126_s20 }
  0x79   : > { %s315_s17 = sshll.u32 %s305_s3, 4  ;;  %s2222_s24 = scalar_lea.hbm %s2801_s2, %s1492_s29  ;;  %s2217_s17 = int_to_ptr.vmem [resolvable:$true] %s315_s17 }
  0x7a   : > { %s302_s19 = scalar_lea.sflag [#allocation3], %s2121_s8  ;;  %s1799_s1 = scalar_lea.hbm %s2214_s26, 4096 }
  0x7b   : > { %p1800_p8 = scmp.ne.s32.totalorder %s2214_s26, %s1799_s1  ;;  %p2855_p10 = scmp.ne.s32.totalorder %s2851_s21, 0 }
  0x7c   : > { %s1804_s23 = scalar_lea.hbm %s2799_s0, 8192  ;;  %p1805_p13 = scmp.lt.u32.totalorder %s2214_s26, %s2799_s0 }
  0x7d   : > { %p1802_p1 = pnand %p1800_p8, %p2855_p10  ;;  %p1806_p5 = scmp.lt.u32.totalorder %s1804_s23, %s1799_s1 }
  0x7e   : > { %p1808_p3 = scmp.lt.u32.totalorder %s1799_s1, %s2214_s26 }
  0x7f   : > { %p1803_p7 = pneg %p1802_p1  ;;  %p1807_p9 = por %p1806_p5, %p1805_p13 }
  0x81   : > { %p1809_p6 = por %p1808_p3, %p1807_p9 }
  0x83   : > { %p1810_p4 = pnand %p1809_p6, %p1803_p7 }
  0x85   : > { %1813 = shalt.err (!%p1810_p4)
}
  0x86   : > { %s1814_s20 = scalar_lea.vmem %s2217_s17, 4096  ;;  %s1960_s29 = smov [#allocation2]  }
  0x87   : > { %p1815_p12 = scmp.ne.s32.totalorder %s2217_s17, %s1814_s20  ;;  %s1819_s15 = sshll.u32 %s1960_s29, 4  ;;  %s1820_s15 = int_to_ptr.vmem [resolvable:$false] %s1819_s15 }
  0x88   : > { %s1821_s3 = scalar_lea.vmem %s1820_s15, 8192  ;;  %p1822_p0 = scmp.lt.s32.totalorder %s2217_s17, %s1820_s15 }
  0x89   : > { %p1817_p2 = pnand %p1815_p12, %p2855_p10  ;;  %p1823_p8 = scmp.lt.s32.totalorder %s1821_s3, %s1814_s20 }
  0x8b   : > { %p1818_p11 = pneg %p1817_p2  ;;  %p1824_p1 = por %p1823_p8, %p1822_p0 }
  0x8d   : > { %p1825_p13 = pnand %p1824_p1, %p1818_p11 }
  0x8f   : > { %1828 = shalt.err (!%p1825_p13)
}
  0x90   : > { %p2856_p7 = scmp.ne.s32.totalorder %s2847_s12, 0  ;;  %s2857_s16 = smov 16  }
  0x91   : > { %s2858_s1 = smov 256   ;;  %s1829_s7 = scalar_lea.hbm %s2222_s24, 512 }
  0x92   : > { %1637 = dma.hbm_to_vmem [thread:$0]  (!%p2856_p7), %s2214_s26, 4096, %s2217_s17, %s302_s19, %s2858_s1, %s2858_s1, %s2857_s16  }
  0x93   : > { %p1830_p5 = scmp.ne.s32.totalorder %s2222_s24, %s1829_s7  ;;  %s1834_s18 = scalar_lea.hbm %s2801_s2, 8192 }
  0x94   : > { %p1835_p6 = scmp.lt.u32.totalorder %s2222_s24, %s2801_s2  ;;  %p1836_p4 = scmp.lt.u32.totalorder %s1834_s18, %s1829_s7 }
  0x95   : > { %p1832_p9 = pnand %p1830_p5, %p2855_p10  ;;  %p1838_p2 = scmp.lt.u32.totalorder %s1829_s7, %s2222_s24 }
  0x96   : > { %p1837_p12 = por %p1836_p4, %p1835_p6 }
  0x97   : > { %p1833_p3 = pneg %p1832_p9 }
  0x98   : > { %p1839_p11 = por %p1838_p2, %p1837_p12 }
  0x9a   : > { %p1840_p0 = pnand %p1839_p11, %p1833_p3 }
  0x9c   : > { %1843 = shalt.err (!%p1840_p0)
}
  0x9d   : > { %s1844_s8 = scalar_lea.vmem %s2187_s22, 512  ;;  %s1961_s26 = smov [#allocation7]  }
  0x9e   : > { %p1845_p8 = scmp.ne.s32.totalorder %s2187_s22, %s1844_s8  ;;  %s1849_s17 = sshll.u32 %s1961_s26, 4  ;;  %s1850_s17 = int_to_ptr.vmem [resolvable:$false] %s1849_s17 }
  0x9f   : > { %s1851_s19 = scalar_lea.vmem %s1850_s17, 1024  ;;  %p1852_p5 = scmp.lt.s32.totalorder %s2187_s22, %s1850_s17 }
  0xa0   : > { %p1847_p1 = pnand %p1845_p8, %p2855_p10  ;;  %p1853_p9 = scmp.lt.s32.totalorder %s1851_s19, %s1844_s8 }
  0xa2   : > { %p1848_p13 = pneg %p1847_p1  ;;  %p1854_p6 = por %p1853_p9, %p1852_p5 }
  0xa4   : > { %p1855_p4 = pnand %p1854_p6, %p1848_p13 }
  0xa6   : > { %1858 = shalt.err (!%p1855_p4)
}
  0xa7   : > { %1643 = dma.hbm_to_vmem [thread:$0]  (!%p2856_p7), %s2222_s24, 512, %s2187_s22, %s2152_s28, %s2858_s1, %s2858_s1, %s2857_s16  }
  0xa8   : > { %p2859_p10 = scmp.ne.s32.totalorder %s2842_s13, 0 }
  0xa9   : > { %s2279_s21 = sand.u32 (!%p2859_p10), 1, %s1933_s25   ;;  %p2860_p3 = scmp.ne.s32.totalorder (!%p2859_p10), %s2838_s10, 0 }
  0xaa   : > { %383 = sbr.rel (%p2859_p10) target bundleno = 534 (0x216), region = 48  ;;  %s1476_s29 = sshll.u32 (!%p2859_p10), %s2279_s21, 8 }
  0xab   : > { %s386_s15 = scalar_lea.sflag (!%p2859_p10), [#allocation3], %s2279_s21  ;;  %s2283_s3 = scalar_lea.vmem (!%p2859_p10), [#allocation2], %s1476_s29 }
  0xb1   : > { %1912 = dma.done.wait (%p2860_p3), %s386_s15, 4096  }
  0xb2   : > { %1914 = vsyncadd (%p2860_p3), %s386_s15, 4294963200  ;;  %s394_s28 = sand.u32 1, %s2037_s30  }
  0xb3   : > { %s395_s12 = scalar_lea.sflag [#allocation6], %s394_s28 }
  0xb4   : > { %1916 = dma.done.wait (%p2860_p3), %s395_s12, 1024  }
  0xb5   : > { %1918 = vsyncadd (%p2860_p3), %s395_s12, 4294966272  ;;  %p2861_p7 = scmp.eq.s32.totalorder %s2037_s30, 0 }
  0xb7   : > { %1920 = dma.done.wait (%p2861_p7), [#allocation9], 2240   ;;  %p2862_p12 = pmov %p2861_p7 }
  0xb8   : > { %v604_v0 = vlaneseq  ;;  %v1145_v1 = vld [vmem:[#allocation10] sm:$0xff]  ;;  %v1146_v2 = vld [vmem:[#allocation10 + $0x8] sm:$0xff]  ;;  %v1147_v3 = vld [vmem:[#allocation10 + $0x10] sm:$0xff]  ;;  %v1962_v8 = vmov 0.0   ;;  %vm583_vm0 = vcmask 1040384   ;;  %vm700_vm1 = vcmask 1046528  }
  0xb9   : > { %1922 = vsyncadd (%p2862_p12), [#allocation9], 4294965056  ;;  %v1563_v4 = vpack.c.bf16 %v1146_v2, %v1145_v1  ;;  %v1148_v5 = vld [vmem:[#allocation10 + $0x18] sm:$0xff]  ;;  %v1149_v6 = vld [vmem:[#allocation10 + $0x20] sm:$0xff]  ;;  %v563_v9 = vrot.slane %v1962_v8, 7  ;;  %vm929_vm2 = vcmask 1045504  }
  0xba   : > { %v1150_v7 = vld [vmem:[#allocation10 + $0x28] sm:$0xff]  ;;  %v605_v10 = vshrl.u32 %v604_v0, 7  ;;  %v1567_v11 = vpack.c.bf16 %v1148_v5, %v1147_v3  ;;  %v1151_v12 = vld [vmem:[#allocation10 + $0x30] sm:$0xff]  ;;  %v1152_v13 = vld [vmem:[#allocation10 + $0x38] sm:$0xff]  ;;  %s1481_s24 = sshll.u32 %s2279_s21, 6  ;;  %s1493_s7 = sshll.u32 %s1941_s27, 10 }
  0xbb   : > { %v1153_v14 = vld [vmem:[#allocation10 + $0x40] sm:$0xff]  ;;  %1564 = vmatprep.subr.bf16.mxu0 %v1563_v4  ;;  %1595 = vmatprep.subr.bf16.mxu1 %v1563_v4  ;;  %v1154_v15 = vld [vmem:[#allocation10 + $0x48] sm:$0xff]  ;;  %v1155_v16 = vld [vmem:[#allocation10 + $0x50] sm:$0xff]  ;;  %v1571_v21 = vpack.c.bf16 %v1150_v7, %v1149_v6  ;;  %v2301_v25 = vsel %vm583_vm0, 0.0, %v563_v9  ;;  %v1575_v27 = vpack.c.bf16 %v1152_v13, %v1151_v12  ;;  %v2320_v48 = vsel %vm583_vm0, %v563_v9, 0.0  ;;  %s455_s16 = scalar_lea.vmem [#allocation11], %s1481_s24 }
  0xbc   : > { %v1156_v17 = vld [vmem:[#allocation10 + $0x58] sm:$0xff]  ;;  %1566 = vmatpush3.bf16.msra.mxu0 %v1563_v4  ;;  %1603 = vmatpush3.bf16.msra.mxu1 %v1563_v4  ;;  %v1157_v18 = vld [vmem:[#allocation10 + $0x60] sm:$0xff]  ;;  %v1158_v19 = vld [vmem:[#allocation10 + $0x68] sm:$0xff]  ;;  %v606_v26 = vsub.s32 0, %v605_v10  ;;  %v666_v32 = vsub.s32 1, %v605_v10  ;;  %v2306_v33 = vsub.s32 2, %v605_v10  ;;  %v2308_v34 = vpack.c.bf16 %v1154_v15, %v1153_v14 }
  0xbd   : > { %v1159_v20 = vld [vmem:[#allocation10 + $0x70] sm:$0xff]  ;;  %1568 = vmatprep.subr.bf16.mxu0 %v1567_v11  ;;  %1596 = vmatprep.subr.bf16.mxu1 %v1567_v11  ;;  %v1160_v22 = vld [vmem:[#allocation10 + $0x78] sm:$0xff]  ;;  %v470_v28 = vld [vmem:[%s2283_s3 + $0x10] sm:$0xff]  ;;  %v2310_v35 = vpack.c.bf16 %v1156_v17, %v1155_v16  ;;  %v2312_v36 = vpack.c.bf16 %v1158_v19, %v1157_v18  ;;  %s1305_s1 = sshll.u32 %s455_s16, 4  ;;  %s2863_s18 = sld [smem:[#allocation25_spill]]  ;;  %s2745_s1 = int_to_ptr.vmem [resolvable:$true] %s1305_s1 }
  0xbe   : > { %v468_v23 = vld [vmem:[%s2283_s3] sm:$0xff]  ;;  %v469_v24 = vld [vmem:[%s2283_s3 + $0x8] sm:$0xff]  ;;  %v471_v29 = vld [vmem:[%s2283_s3 + $0x18] sm:$0xff]  ;;  %v2317_v41 = vpack.c.bf16 %v1160_v22, %v1159_v20  ;;  %s1290_s20 = scalar_lea.sflag [#allocation4], %s2279_s21  ;;  %s1859_s8 = scalar_lea.vmem %s2745_s1, 1024 }
  0xbf   : > { %v472_v30 = vld [vmem:[%s2283_s3 + $0x20] sm:$0xff]  ;;  %v500_v31 = vmax.f32 %v468_v23, %v469_v24  ;;  %v473_v37 = vld [vmem:[%s2283_s3 + $0x28] sm:$0xff]  ;;  %v474_v38 = vld [vmem:[%s2283_s3 + $0x30] sm:$0xff]  ;;  %v501_v40 = vmax.f32 %v470_v28, %v471_v29  ;;  %p1860_p2 = scmp.ne.s32.totalorder %s2745_s1, %s1859_s8  ;;  %p2864_p11 = scmp.ne.s32.totalorder %s2839_s11, 0 }
  0xc0   : > { %v475_v39 = vld [vmem:[%s2283_s3 + $0x38] sm:$0xff]  ;;  %1570 = vmatpush3.bf16.msra.mxu0 %v1567_v11  ;;  %1604 = vmatpush3.bf16.msra.mxu1 %v1567_v11  ;;  %v502_v42 = vmax.f32 %v472_v30, %v473_v37  ;;  %v550_v44 = vld [vmem:[#allocation8] sm:$0x7]  ;;  %v551_v45 = vld [vmem:[#allocation8 + $0x4] sm:$0x7]  ;;  %s1963_s27 = smov [#allocation11]  }
  0xc1   : > { %v503_v43 = vmax.f32 %v474_v38, %v475_v39  ;;  %v552_v46 = vld [vmem:[#allocation8 + $0x8] sm:$0x7]  ;;  %1572 = vmatprep.subr.bf16.mxu0 %v1571_v21  ;;  %1597 = vmatprep.subr.bf16.mxu1 %v1571_v21  ;;  %v516_v47 = vmax.f32 %v500_v31, %v501_v40  ;;  %v2322_v49 = vrot.slane %v550_v44, %v606_v26  ;;  %v480_v22 = vld [vmem:[%s2283_s3 + $0x60] sm:$0xff]  ;;  %v482_v24 = vld [vmem:[%s2283_s3 + $0x70] sm:$0xff]  ;;  %p1861_p0 = pnand %p1860_p2, %p2864_p11  ;;  %s1863_s26 = sshll.u32 %s1963_s27, 4  ;;  %s1864_s26 = int_to_ptr.vmem [resolvable:$false] %s1863_s26 }
  0xc2   : > { %v2324_v50 = vrot.slane %v551_v45, %v606_v26  ;;  %v2326_v52 = vrot.slane %v552_v46, %v606_v26  ;;  %v2328_v53 = vrot.slane %v550_v44, %v666_v32  ;;  %v2330_v54 = vrot.slane %v551_v45, %v666_v32  ;;  %v481_v23 = vld [vmem:[%s2283_s3 + $0x68] sm:$0xff]  ;;  %v483_v30 = vld [vmem:[%s2283_s3 + $0x78] sm:$0xff]  ;;  %v484_v31 = vld [vmem:[%s2283_s3 + $0x80] sm:$0xff]  ;;  %s1865_s17 = scalar_lea.vmem %s1864_s26, 2048  ;;  %p1866_p1 = scmp.lt.s32.totalorder %s2745_s1, %s1864_s26 }
  0xc3   : > { %v517_v51 = vmax.f32 %v502_v42, %v503_v43  ;;  %v564_v55 = vrot.slane %v516_v47, 7  ;;  %v608_v56 = vmul.f32 %v2322_v49, %v2301_v25  ;;  %v2334_v57 = vrot.slane %v552_v46, %v666_v32  ;;  %v485_v32 = vld [vmem:[%s2283_s3 + $0x88] sm:$0xff]  ;;  %v486_v40 = vld [vmem:[%s2283_s3 + $0x90] sm:$0xff]  ;;  %v487_v42 = vld [vmem:[%s2283_s3 + $0x98] sm:$0xff]  ;;  %s2750_s9 = scalar_lea.hbm %s2863_s18, %s1493_s7  ;;  %p1862_p8 = pneg %p1861_p0 }
  0xc4   : > { %v2337_v58 = vrot.slane %v550_v44, %v2306_v33  ;;  %1574 = vmatpush3.bf16.msra.mxu0 %v1571_v21  ;;  %1605 = vmatpush3.bf16.msra.mxu1 %v1571_v21  ;;  %v668_v60 = vmul.f32 %v2328_v53, %v2301_v25  ;;  %v669_v61 = vmul.f32 %v2328_v53, %v2320_v48  ;;  %v490_v47 = vld [vmem:[%s2283_s3 + $0xb0] sm:$0xff]  ;;  %p1867_p13 = scmp.lt.s32.totalorder %s1865_s17, %s1859_s8 }
  0xc5   : > { %v565_v59 = vrot.slane %v517_v51, 7  ;;  %v2344_v62 = vrot.slane %v551_v45, %v2306_v33  ;;  %1576 = vmatprep.subr.bf16.mxu0 %v1575_v27  ;;  %1598 = vmatprep.subr.bf16.mxu1 %v1575_v27  ;;  %v2347_v63 = vsel %vm583_vm0, 0.0, %v564_v55  ;;  %v2350_v0 = vsel %vm583_vm0, %v564_v55, 0.0  ;;  %v491_v51 = vld [vmem:[%s2283_s3 + $0xb8] sm:$0xff] }
  0xc6   : > { %v897_v1 = vmul.f32 %v2337_v58, %v2301_v25  ;;  %v898_v2 = vmul.f32 %v2337_v58, %v2320_v48  ;;  %v628_v5 = vmul.f32 %v2324_v50, %v2347_v63  ;;  %v2366_v6 = vmul.f32 %v2328_v53, %v2350_v0  ;;  %p1868_p5 = por %p1867_p13, %p1866_p1 }
  0xc7   : > { %v2357_v3 = vsel %vm583_vm0, 0.0, %v565_v59  ;;  %v2360_v4 = vsel %vm583_vm0, %v565_v59, 0.0  ;;  %v701_v8 = vrot.slane %v668_v60, 1  ;;  %v702_v9 = vrot.slane %v669_v61, 1  ;;  %v476_v61 = vld [vmem:[%s2283_s3 + $0x40] sm:$0xff] }
  0xc8   : > { %v648_v7 = vmul.f32 %v2326_v52, %v2357_v3  ;;  %v745_v10 = vmul.f32 %v2330_v54, %v2347_v63  ;;  %1578 = vmatpush3.bf16.msra.mxu0 %v1575_v27  ;;  %1606 = vmatpush3.bf16.msra.mxu1 %v1575_v27  ;;  %v636_v11 = vadd.f32 %v628_v5, %v608_v56  ;;  %v930_v17 = vrot.slane %v897_v1, 2  ;;  %v477_v1 = vld [vmem:[%s2283_s3 + $0x48] sm:$0xff]  ;;  %p1869_p9 = pnand %p1868_p5, %p1862_p8 }
  0xc9   : > { %v746_v12 = vmul.f32 %v2330_v54, %v2350_v0  ;;  %v821_v13 = vmul.f32 %v2334_v57, %v2357_v3  ;;  %1580 = vmatprep.subr.bf16.mxu0 %v2308_v34  ;;  %1599 = vmatprep.subr.bf16.mxu1 %v2308_v34  ;;  %v703_v14 = vsel %vm700_vm1, %v701_v8, %v702_v9  ;;  %v931_v21 = vrot.slane %v898_v2, 2  ;;  %v478_v9 = vld [vmem:[%s2283_s3 + $0x50] sm:$0xff] }
  0xca   : > { %v777_v15 = vrot.slane %v745_v10, 1  ;;  %v822_v16 = vmul.f32 %v2334_v57, %v2360_v4  ;;  %v656_v18 = vadd.f32 %v648_v7, %v636_v11  ;;  %v974_v27 = vmul.f32 %v2344_v62, %v2347_v63  ;;  %v479_v10 = vld [vmem:[%s2283_s3 + $0x58] sm:$0xff] }
  0xcb   : > { %v778_v19 = vrot.slane %v746_v12, 1  ;;  %v853_v20 = vrot.slane %v821_v13, 1  ;;  %v975_v28 = vmul.f32 %v2344_v62, %v2350_v0  ;;  %v2389_v29 = vrot.slane %v552_v46, %v2306_v33  ;;  %v488_v33 = vld [vmem:[%s2283_s3 + $0xa0] sm:$0xff]  ;;  %v489_v46 = vld [vmem:[%s2283_s3 + $0xa8] sm:$0xff] }
  0xcc   : > { %v854_v26 = vrot.slane %v822_v16, 1  ;;  %1582 = vmatpush3.bf16.msra.mxu0 %v2308_v34  ;;  %1607 = vmatpush3.bf16.msra.mxu1 %v2308_v34  ;;  %v733_v37 = vadd.f32 %v703_v14, %v656_v18  ;;  %v932_v39 = vsel %vm929_vm2, %v930_v17, %v931_v21  ;;  %v1006_v44 = vrot.slane %v974_v27, 2 }
  0xcd   : > { %v779_v38 = vsel %vm700_vm1, %v777_v15, %v778_v19  ;;  %1584 = vmatprep.subr.bf16.mxu0 %v2310_v35  ;;  %1600 = vmatprep.subr.bf16.mxu1 %v2310_v35  ;;  %v1007_v45 = vrot.slane %v975_v28, 2  ;;  %v1050_v34 = vmul.f32 %v2389_v29, %v2357_v3  ;;  %v1051_v56 = vmul.f32 %v2389_v29, %v2360_v4 }
  0xce   : > { %v855_v43 = vsel %vm700_vm1, %v853_v20, %v854_v26  ;;  %v809_v55 = vadd.f32 %v779_v38, %v733_v37  ;;  %v506_v59 = vmax.f32 %v480_v22, %v481_v23  ;;  %v507_v60 = vmax.f32 %v482_v24, %v483_v30 }
  0xcf   : > { %v1008_v2 = vsel %vm929_vm2, %v1006_v44, %v1007_v45  ;;  %v1082_v5 = vrot.slane %v1050_v34, 2  ;;  %v508_v7 = vmax.f32 %v484_v31, %v485_v32  ;;  %v509_v8 = vmax.f32 %v486_v40, %v487_v42  ;;  %v2437_v32 = vld [vmem:[%s2803_s4] ss:$0 sm:$0xff] }
  0xd0   : > { %1586 = vmatpush3.bf16.msra.mxu0 %v2310_v35  ;;  %1608 = vmatpush3.bf16.msra.mxu1 %v2310_v35  ;;  %v885_v11 = vadd.f32 %v855_v43, %v809_v55  ;;  %v1083_v12 = vrot.slane %v1051_v56, 2  ;;  %v510_v13 = vmax.f32 %v488_v33, %v489_v46  ;;  %v511_v14 = vmax.f32 %v490_v47, %v491_v51 }
  0xd1   : > { %1588 = vmatprep.subr.bf16.mxu0 %v2312_v36  ;;  %1601 = vmatprep.subr.bf16.mxu1 %v2312_v36  ;;  %v705_v15 = vrot.slane %v2366_v6, 1  ;;  %v519_v16 = vmax.f32 %v506_v59, %v507_v60  ;;  %v520_v17 = vmax.f32 %v508_v7, %v509_v8  ;;  %v504_v18 = vmax.f32 %v476_v61, %v477_v1 }
  0xd2   : > { %v962_v19 = vadd.f32 %v932_v39, %v885_v11  ;;  %v1084_v20 = vsel %vm929_vm2, %v1082_v5, %v1083_v12  ;;  %v521_v21 = vmax.f32 %v510_v13, %v511_v14  ;;  %v505_v22 = vmax.f32 %v478_v9, %v479_v10 }
  0xd3   : > { %v567_v23 = vrot.slane %v519_v16, 7  ;;  %v568_v35 = vrot.slane %v520_v17, 7  ;;  %v609_v24 = vmul.f32 %v2322_v49, %v2347_v63  ;;  %v629_v26 = vmul.f32 %v2324_v50, %v2357_v3 }
  0xd4   : > { %1590 = vmatpush3.bf16.msra.mxu0 %v2312_v36  ;;  %1609 = vmatpush3.bf16.msra.mxu1 %v2312_v36  ;;  %v1038_v27 = vadd.f32 %v1008_v2, %v962_v19  ;;  %v569_v28 = vrot.slane %v521_v21, 7  ;;  %v518_v30 = vmax.f32 %v504_v18, %v505_v22  ;;  %v2430_v31 = vmul.f32 %v2328_v53, %v2347_v63 }
  0xd5   : > { %1592 = vmatprep.subr.bf16.mxu0 %v2317_v41  ;;  %1602 = vmatprep.subr.bf16.mxu1 %v2317_v41  ;;  %v2440_v37 = vsel %vm583_vm0, 0.0, %v567_v23  ;;  %v2443_v36 = vsel %vm583_vm0, 0.0, %v568_v35  ;;  %v2446_v38 = vsel %vm583_vm0, %v567_v23, 0.0  ;;  %v2449_v39 = vsel %vm583_vm0, %v568_v35, 0.0 }
  0xd6   : > { %v1114_v40 = vadd.f32 %v1084_v20, %v1038_v27  ;;  %v2452_v42 = vsel %vm583_vm0, 0.0, %v569_v28  ;;  %v2455_v33 = vsel %vm583_vm0, %v569_v28, 0.0  ;;  %v612_v43 = vmul.f32 %v2322_v49, %v2440_v37 }
  0xd7   : > { %v632_v44 = vmul.f32 %v2324_v50, %v2443_v36  ;;  %v652_v45 = vmul.f32 %v2326_v52, %v2452_v42  ;;  %v676_v34 = vmul.f32 %v2328_v53, %v2440_v37  ;;  %v677_v46 = vmul.f32 %v2328_v53, %v2446_v38 }
  0xd8   : > { %1594 = vmatpush3.bf16.msra.mxu0 %v2317_v41  ;;  %1610 = vmatpush3.bf16.msra.mxu1 %v2317_v41  ;;  %v1129_v47 = vadd.f32 %v2437_v32, %v1114_v40  ;;  %v753_v51 = vmul.f32 %v2330_v54, %v2443_v36  ;;  %v754_v55 = vmul.f32 %v2330_v54, %v2449_v39  ;;  %v566_v56 = vrot.slane %v518_v30, 7 }
  0xd9   : > { %v640_v59 = vadd.f32 %v632_v44, %v612_v43  ;;  %v713_v60 = vrot.slane %v676_v34, 1  ;;  %v714_v61 = vrot.slane %v677_v46, 1  ;;  %v829_v1 = vmul.f32 %v2334_v57, %v2452_v42 }
  0xda   : > { %v1137_v2 = vmax.f32 %v1129_v47, 0.0  ;;  %v789_v5 = vrot.slane %v753_v51, 1  ;;  %v790_v7 = vrot.slane %v754_v55, 1  ;;  %v830_v41 = vmul.f32 %v2334_v57, %v2455_v33 }
  0xdb   : > { %v660_v8 = vadd.f32 %v652_v45, %v640_v59  ;;  %v715_v9 = vsel %vm700_vm1, %v713_v60, %v714_v61  ;;  %v865_v10 = vrot.slane %v829_v1, 1  ;;  %v905_v11 = vmul.f32 %v2337_v58, %v2440_v37 }
  0xdc   : > { %1551 = vmatprep.mubr.f32.mxu0 %v1137_v2  ;;  %v791_v12 = vsel %vm700_vm1, %v789_v5, %v790_v7  ;;  %v866_v13 = vrot.slane %v830_v41, 1  ;;  %v906_v14 = vmul.f32 %v2337_v58, %v2446_v38  ;;  %v982_v16 = vmul.f32 %v2344_v62, %v2443_v36 }
  0xdd   : > { %v737_v17 = vadd.f32 %v715_v9, %v660_v8  ;;  %v942_v18 = vrot.slane %v905_v11, 2  ;;  %v983_v19 = vmul.f32 %v2344_v62, %v2449_v39  ;;  %v1058_v20 = vmul.f32 %v2389_v29, %v2452_v42 }
  0xde   : > { %v867_v21 = vsel %vm700_vm1, %v865_v10, %v866_v13  ;;  %v943_v22 = vrot.slane %v906_v14, 2  ;;  %v1018_v23 = vrot.slane %v982_v16, 2  ;;  %v1059_v35 = vmul.f32 %v2389_v29, %v2455_v33  ;;  %v492_v14 = vld [vmem:[%s2283_s3 + $0xc0] sm:$0xff]  ;;  %v493_v16 = vld [vmem:[%s2283_s3 + $0xc8] sm:$0xff] }
  0xdf   : > { %v813_v27 = vadd.f32 %v791_v12, %v737_v17  ;;  %v1019_v28 = vrot.slane %v983_v19, 2  ;;  %v1094_v30 = vrot.slane %v1058_v20, 2  ;;  %v2494_v40 = vsel %vm583_vm0, 0.0, %v566_v56  ;;  %v494_v20 = vld [vmem:[%s2283_s3 + $0xd0] sm:$0xff] }
  0xe0   : > { %v944_v43 = vsel %vm929_vm2, %v942_v18, %v943_v22  ;;  %v1095_v44 = vrot.slane %v1059_v35, 2  ;;  %v2498_v45 = vsel %vm583_vm0, %v566_v56, 0.0  ;;  %v637_v34 = vadd.f32 %v629_v26, %v609_v24 }
  0xe1   : > { %v889_v46 = vadd.f32 %v867_v21, %v813_v27  ;;  %v1020_v47 = vsel %vm929_vm2, %v1018_v23, %v1019_v28  ;;  %v649_v51 = vmul.f32 %v2326_v52, %v2494_v40  ;;  %v704_v55 = vrot.slane %v2430_v31, 1  ;;  %v495_v21 = vld [vmem:[%s2283_s3 + $0xd8] sm:$0xff] }
  0xe2   : > { %v1096_v59 = vsel %vm929_vm2, %v1094_v30, %v1095_v44  ;;  %v747_v60 = vmul.f32 %v2330_v54, %v2357_v3  ;;  %v748_v61 = vmul.f32 %v2330_v54, %v2360_v4  ;;  %v823_v56 = vmul.f32 %v2334_v57, %v2494_v40 }
  0xe3   : > { %v966_v24 = vadd.f32 %v944_v43, %v889_v46  ;;  %v657_v26 = vadd.f32 %v649_v51, %v637_v34  ;;  %v706_v1 = vsel %vm700_vm1, %v704_v55, %v705_v15  ;;  %v824_v31 = vmul.f32 %v2334_v57, %v2498_v45 }
  0xe4   : > { %v780_v2 = vrot.slane %v747_v60, 1  ;;  %v781_v5 = vrot.slane %v748_v61, 1  ;;  %v856_v7 = vrot.slane %v823_v56, 1  ;;  %v899_v41 = vmul.f32 %v2337_v58, %v2347_v63 }
  0xe5   : > { %v1042_v8 = vadd.f32 %v1020_v47, %v966_v24  ;;  %v734_v9 = vadd.f32 %v706_v1, %v657_v26  ;;  %v857_v10 = vrot.slane %v824_v31, 1  ;;  %v900_v6 = vmul.f32 %v2337_v58, %v2350_v0 }
  0xe6   : > { %v782_v11 = vsel %vm700_vm1, %v780_v2, %v781_v5  ;;  %v933_v15 = vrot.slane %v899_v41, 2  ;;  %v976_v12 = vmul.f32 %v2344_v62, %v2357_v3  ;;  %v977_v13 = vmul.f32 %v2344_v62, %v2360_v4 }
  0xe7   : > { %v1118_v17 = vadd.f32 %v1096_v59, %v1042_v8  ;;  %v810_v63 = vadd.f32 %v782_v11, %v734_v9  ;;  %v858_v18 = vsel %vm700_vm1, %v856_v7, %v857_v10  ;;  %v934_v19 = vrot.slane %v900_v6, 2 }
  0xe8   : > { %v1009_v22 = vrot.slane %v976_v12, 2  ;;  %v1010_v0 = vrot.slane %v977_v13, 2  ;;  %v1052_v23 = vmul.f32 %v2389_v29, %v2494_v40  ;;  %v1053_v35 = vmul.f32 %v2389_v29, %v2498_v45 }
  0xe9   : > { %v1133_v27 = vadd.f32 %v2437_v32, %v1118_v17  ;;  %v886_v28 = vadd.f32 %v858_v18, %v810_v63  ;;  %v935_v30 = vsel %vm929_vm2, %v933_v15, %v934_v19  ;;  %v512_v43 = vmax.f32 %v492_v14, %v493_v16 }
  0xea   : > { %v1011_v44 = vsel %vm929_vm2, %v1009_v22, %v1010_v0  ;;  %v1085_v34 = vrot.slane %v1052_v23, 2  ;;  %v1086_v46 = vrot.slane %v1053_v35, 2  ;;  %v513_v47 = vmax.f32 %v494_v20, %v495_v21 }
  0xeb   : > { %v1141_v51 = vmax.f32 %v1133_v27, 0.0  ;;  %v963_v55 = vadd.f32 %v935_v30, %v886_v28  ;;  %v613_v59 = vmul.f32 %v2322_v49, %v2443_v36  ;;  %v633_v60 = vmul.f32 %v2324_v50, %v2452_v42 }
  0xec   : > { %v1087_v61 = vsel %vm929_vm2, %v1085_v34, %v1086_v46  ;;  %v522_v56 = vmax.f32 %v512_v43, %v513_v47  ;;  %v678_v24 = vmul.f32 %v2328_v53, %v2443_v36  ;;  %v679_v26 = vmul.f32 %v2328_v53, %v2449_v39 }
  0xed   : > { %1557 = vmatprep.mubr.f32.mxu1 %v1141_v51  ;;  %v1039_v1 = vadd.f32 %v1011_v44, %v963_v55  ;;  %v641_v31 = vadd.f32 %v633_v60, %v613_v59  ;;  %v755_v2 = vmul.f32 %v2330_v54, %v2452_v42  ;;  %v756_v5 = vmul.f32 %v2330_v54, %v2455_v33 }
  0xee   : > { %v570_v7 = vrot.slane %v522_v56, 7  ;;  %v716_v41 = vrot.slane %v678_v24, 1  ;;  %v717_v8 = vrot.slane %v679_v26, 1  ;;  %v907_v9 = vmul.f32 %v2337_v58, %v2443_v36 }
  0xef   : > { %v1115_v10 = vadd.f32 %v1087_v61, %v1039_v1  ;;  %v792_v6 = vrot.slane %v755_v2, 1  ;;  %v793_v11 = vrot.slane %v756_v5, 1  ;;  %v908_v15 = vmul.f32 %v2337_v58, %v2449_v39 }
  0xf0   : > { %v2555_v12 = vsel %vm583_vm0, 0.0, %v570_v7  ;;  %v2558_v13 = vsel %vm583_vm0, %v570_v7, 0.0  ;;  %v718_v14 = vsel %vm700_vm1, %v716_v41, %v717_v8  ;;  %v945_v16 = vrot.slane %v907_v9, 2 }
  0xf1   : > { %v1130_v17 = vadd.f32 %v2437_v32, %v1115_v10  ;;  %v653_v63 = vmul.f32 %v2326_v52, %v2555_v12  ;;  %v794_v18 = vsel %vm700_vm1, %v792_v6, %v793_v11  ;;  %v831_v19 = vmul.f32 %v2334_v57, %v2555_v12 }
  0xf2   : > { %v832_v20 = vmul.f32 %v2334_v57, %v2558_v13  ;;  %v946_v21 = vrot.slane %v908_v15, 2  ;;  %v984_v22 = vmul.f32 %v2344_v62, %v2452_v42  ;;  %v985_v0 = vmul.f32 %v2344_v62, %v2455_v33 }
  0xf3   : > { %v1138_v23 = vmax.f32 %v1130_v17, 0.0  ;;  %v661_v35 = vadd.f32 %v653_v63, %v641_v31  ;;  %v868_v27 = vrot.slane %v831_v19, 1  ;;  %v1060_v28 = vmul.f32 %v2389_v29, %v2555_v12 }
  0xf4   : > { %v869_v30 = vrot.slane %v832_v20, 1  ;;  %v947_v43 = vsel %vm929_vm2, %v945_v16, %v946_v21  ;;  %v1021_v44 = vrot.slane %v984_v22, 2  ;;  %v1022_v34 = vrot.slane %v985_v0, 2 }
  0xf5   : > { %1552 = vmatmul.mubr.f32.vlgmr.msra.gmra.mrb[0].mxu0 %v1138_v23  ;;  %v738_v46 = vadd.f32 %v718_v14, %v661_v35  ;;  %v1061_v47 = vmul.f32 %v2389_v29, %v2558_v13  ;;  %v1097_v51 = vrot.slane %v1060_v28, 2  ;;  %v610_v55 = vmul.f32 %v2322_v49, %v2357_v3 }
  0xf6   : > { %v870_v59 = vsel %vm700_vm1, %v868_v27, %v869_v30  ;;  %v1023_v60 = vsel %vm929_vm2, %v1021_v44, %v1022_v34  ;;  %v630_v61 = vmul.f32 %v2324_v50, %v2494_v40  ;;  %v650_v56 = vmul.f32 %v2326_v52, %v2440_v37  ;;  %v496_v30 = vld [vmem:[%s2283_s3 + $0xe0] sm:$0xff] }
  0xf7   : > { %v814_v24 = vadd.f32 %v794_v18, %v738_v46  ;;  %v1098_v26 = vrot.slane %v1061_v47, 2  ;;  %v672_v1 = vmul.f32 %v2328_v53, %v2357_v3  ;;  %v673_v31 = vmul.f32 %v2328_v53, %v2360_v4  ;;  %v498_v47 = vld [vmem:[%s2283_s3 + $0xf0] sm:$0xff] }
  0xf8   : > { %v638_v2 = vadd.f32 %v630_v61, %v610_v55  ;;  %v749_v5 = vmul.f32 %v2330_v54, %v2494_v40  ;;  %v750_v7 = vmul.f32 %v2330_v54, %v2498_v45  ;;  %v825_v41 = vmul.f32 %v2334_v57, %v2440_v37 }
  0xf9   : > { %v890_v8 = vadd.f32 %v870_v59, %v814_v24  ;;  %v1099_v9 = vsel %vm929_vm2, %v1097_v51, %v1098_v26  ;;  %v707_v10 = vrot.slane %v672_v1, 1  ;;  %v708_v6 = vrot.slane %v673_v31, 1  ;;  %v499_v51 = vld [vmem:[%s2283_s3 + $0xf8] sm:$0xff] }
  0xfa   : > { %v658_v11 = vadd.f32 %v650_v56, %v638_v2  ;;  %v783_v15 = vrot.slane %v749_v5, 1  ;;  %v784_v14 = vrot.slane %v750_v7, 1  ;;  %v826_v16 = vmul.f32 %v2334_v57, %v2446_v38 }
  0xfb   : > { %v967_v17 = vadd.f32 %v947_v43, %v890_v8  ;;  %v709_v63 = vsel %vm700_vm1, %v707_v10, %v708_v6  ;;  %v859_v18 = vrot.slane %v825_v41, 1  ;;  %v901_v19 = vmul.f32 %v2337_v58, %v2357_v3  ;;  %v497_v43 = vld [vmem:[%s2283_s3 + $0xe8] sm:$0xff] }
  0xfc   : > { %v735_v20 = vadd.f32 %v709_v63, %v658_v11  ;;  %v785_v21 = vsel %vm700_vm1, %v783_v15, %v784_v14  ;;  %v860_v22 = vrot.slane %v826_v16, 1  ;;  %v902_v0 = vmul.f32 %v2337_v58, %v2360_v4 }
  0xfd   : > { %v1043_v23 = vadd.f32 %v1023_v60, %v967_v17  ;;  %v936_v35 = vrot.slane %v901_v19, 2  ;;  %v978_v27 = vmul.f32 %v2344_v62, %v2494_v40  ;;  %v979_v28 = vmul.f32 %v2344_v62, %v2498_v45 }
  0xfe   : > { %v811_v44 = vadd.f32 %v785_v21, %v735_v20  ;;  %v861_v3 = vsel %vm700_vm1, %v859_v18, %v860_v22  ;;  %v937_v34 = vrot.slane %v902_v0, 2  ;;  %v1054_v46 = vmul.f32 %v2389_v29, %v2440_v37 }
  0xff   : > { %v1119_v4 = vadd.f32 %v1099_v9, %v1043_v23  ;;  %v1012_v55 = vrot.slane %v978_v27, 2  ;;  %v1013_v59 = vrot.slane %v979_v28, 2  ;;  %v1055_v60 = vmul.f32 %v2389_v29, %v2446_v38 }
 0x100   : > { %v887_v61 = vadd.f32 %v861_v3, %v811_v44  ;;  %v938_v56 = vsel %vm929_vm2, %v936_v35, %v937_v34  ;;  %v1088_v24 = vrot.slane %v1054_v46, 2  ;;  %v514_v26 = vmax.f32 %v496_v30, %v497_v43 }
 0x101   : > { %v1134_v1 = vadd.f32 %v2437_v32, %v1119_v4  ;;  %v1014_v31 = vsel %vm929_vm2, %v1012_v55, %v1013_v59  ;;  %v1089_v2 = vrot.slane %v1055_v60, 2  ;;  %v515_v5 = vmax.f32 %v498_v47, %v499_v51 }
 0x102   : > { %v964_v7 = vadd.f32 %v938_v56, %v887_v61  ;;  %v614_v41 = vmul.f32 %v2322_v49, %v2452_v42  ;;  %v634_v8 = vmul.f32 %v2324_v50, %v2555_v12  ;;  %v680_v9 = vmul.f32 %v2328_v53, %v2452_v42 }
 0x103   : > { %v1142_v10 = vmax.f32 %v1134_v1, 0.0  ;;  %v1090_v6 = vsel %vm929_vm2, %v1088_v24, %v1089_v2  ;;  %v523_v11 = vmax.f32 %v514_v26, %v515_v5  ;;  %v681_v15 = vmul.f32 %v2328_v53, %v2455_v33 }
 0x104   : > { %v1040_v14 = vadd.f32 %v1014_v31, %v964_v7  ;;  %v642_v16 = vadd.f32 %v634_v8, %v614_v41  ;;  %v719_v17 = vrot.slane %v680_v9, 1  ;;  %v757_v63 = vmul.f32 %v2330_v54, %v2555_v12 }
 0x105   : > { %1558 = vmatmul.mubr.f32.vlgmr.msra.gmra.mrb[0].mxu1 %v1142_v10  ;;  %v571_v18 = vrot.slane %v523_v11, 7  ;;  %v720_v19 = vrot.slane %v681_v15, 1  ;;  %v758_v20 = vmul.f32 %v2330_v54, %v2558_v13  ;;  %v909_v21 = vmul.f32 %v2337_v58, %v2452_v42 }
 0x106   : > { %v1116_v22 = vadd.f32 %v1090_v6, %v1040_v14  ;;  %v795_v0 = vrot.slane %v757_v63, 1  ;;  %v910_v23 = vmul.f32 %v2337_v58, %v2455_v33  ;;  %v986_v35 = vmul.f32 %v2344_v62, %v2555_v12 }
 0x107   : > { %v2641_v27 = vsel %vm583_vm0, 0.0, %v571_v18  ;;  %v2644_v28 = vsel %vm583_vm0, %v571_v18, 0.0  ;;  %v721_v30 = vsel %vm700_vm1, %v719_v17, %v720_v19  ;;  %v796_v43 = vrot.slane %v758_v20, 1 }
 0x108   : > { %v1131_v44 = vadd.f32 %v2437_v32, %v1116_v22  ;;  %v654_v42 = vmul.f32 %v2326_v52, %v2641_v27  ;;  %v833_v33 = vmul.f32 %v2334_v57, %v2641_v27  ;;  %v834_v3 = vmul.f32 %v2334_v57, %v2644_v28 }
 0x109   : > { %v797_v34 = vsel %vm700_vm1, %v795_v0, %v796_v43  ;;  %v948_v46 = vrot.slane %v909_v21, 2  ;;  %v949_v47 = vrot.slane %v910_v23, 2  ;;  %v987_v51 = vmul.f32 %v2344_v62, %v2558_v13 }
 0x10a   : > { %v1139_v4 = vmax.f32 %v1131_v44, 0.0  ;;  %v662_v55 = vadd.f32 %v654_v42, %v642_v16  ;;  %v871_v59 = vrot.slane %v833_v33, 1  ;;  %v872_v60 = vrot.slane %v834_v3, 1 }
 0x10b   : > { %v950_v61 = vsel %vm929_vm2, %v948_v46, %v949_v47  ;;  %v1024_v56 = vrot.slane %v986_v35, 2  ;;  %v1025_v24 = vrot.slane %v987_v51, 2  ;;  %v1062_v26 = vmul.f32 %v2389_v29, %v2641_v27 }
 0x10c   : > { %1554 = vmatprep.mubr.f32.mxu0 %v1139_v4  ;;  %v739_v1 = vadd.f32 %v721_v30, %v662_v55  ;;  %v873_v31 = vsel %vm700_vm1, %v871_v59, %v872_v60  ;;  %v1063_v2 = vmul.f32 %v2389_v29, %v2644_v28  ;;  %v611_v5 = vmul.f32 %v2322_v49, %v2494_v40 }
 0x10d   : > { %v1026_v7 = vsel %vm929_vm2, %v1024_v56, %v1025_v24  ;;  %v1100_v41 = vrot.slane %v1062_v26, 2  ;;  %v631_v8 = vmul.f32 %v2324_v50, %v2440_v37  ;;  %v651_v9 = vmul.f32 %v2326_v52, %v2443_v36 }
 0x10e   : > { %v815_v10 = vadd.f32 %v797_v34, %v739_v1  ;;  %v1101_v6 = vrot.slane %v1063_v2, 2  ;;  %v674_v11 = vmul.f32 %v2328_v53, %v2494_v40  ;;  %v675_v15 = vmul.f32 %v2328_v53, %v2498_v45 }
 0x10f   : > { %v639_v14 = vadd.f32 %v631_v8, %v611_v5  ;;  %v751_v16 = vmul.f32 %v2330_v54, %v2440_v37  ;;  %v752_v17 = vmul.f32 %v2330_v54, %v2446_v38  ;;  %v827_v63 = vmul.f32 %v2334_v57, %v2443_v36 }
 0x110   : > { %v891_v18 = vadd.f32 %v873_v31, %v815_v10  ;;  %v1102_v19 = vsel %vm929_vm2, %v1100_v41, %v1101_v6  ;;  %v710_v20 = vrot.slane %v674_v11, 1  ;;  %v711_v21 = vrot.slane %v675_v15, 1 }
 0x111   : > { %v659_v22 = vadd.f32 %v651_v9, %v639_v14  ;;  %v786_v0 = vrot.slane %v751_v16, 1  ;;  %v787_v23 = vrot.slane %v752_v17, 1  ;;  %v828_v35 = vmul.f32 %v2334_v57, %v2449_v39 }
 0x112   : > { %v968_v30 = vadd.f32 %v950_v61, %v891_v18  ;;  %v712_v43 = vsel %vm700_vm1, %v710_v20, %v711_v21  ;;  %v862_v44 = vrot.slane %v827_v63, 1  ;;  %v903_v42 = vmul.f32 %v2337_v58, %v2494_v40 }
 0x113   : > { %v736_v33 = vadd.f32 %v712_v43, %v659_v22  ;;  %v788_v3 = vsel %vm700_vm1, %v786_v0, %v787_v23  ;;  %v863_v34 = vrot.slane %v828_v35, 1  ;;  %v904_v46 = vmul.f32 %v2337_v58, %v2498_v45 }
 0x114   : > { %v1044_v47 = vadd.f32 %v1026_v7, %v968_v30  ;;  %v939_v51 = vrot.slane %v903_v42, 2  ;;  %v980_v4 = vmul.f32 %v2344_v62, %v2440_v37  ;;  %v981_v55 = vmul.f32 %v2344_v62, %v2446_v38 }
 0x115   : > { %v812_v59 = vadd.f32 %v788_v3, %v736_v33  ;;  %v864_v60 = vsel %vm700_vm1, %v862_v44, %v863_v34  ;;  %v940_v61 = vrot.slane %v904_v46, 2  ;;  %v1056_v40 = vmul.f32 %v2389_v29, %v2443_v36 }
 0x116   : > { %v1120_v56 = vadd.f32 %v1102_v19, %v1044_v47  ;;  %v1015_v24 = vrot.slane %v980_v4, 2  ;;  %v1016_v26 = vrot.slane %v981_v55, 2  ;;  %v1057_v45 = vmul.f32 %v2389_v29, %v2449_v39 }
 0x117   : > { %v888_v1 = vadd.f32 %v864_v60, %v812_v59  ;;  %v941_v31 = vsel %vm929_vm2, %v939_v51, %v940_v61  ;;  %v1091_v37 = vrot.slane %v1056_v40, 2  ;;  %v615_v38 = vmul.f32 %v2322_v49, %v2555_v12 }
 0x118   : > { %v1135_v2 = vadd.f32 %v2437_v32, %v1120_v56  ;;  %v1017_v5 = vsel %vm929_vm2, %v1015_v24, %v1016_v26  ;;  %v1092_v7 = vrot.slane %v1057_v45, 2  ;;  %v635_v36 = vmul.f32 %v2324_v50, %v2641_v27 }
 0x119   : > { %v965_v41 = vadd.f32 %v941_v31, %v888_v1  ;;  %v655_v8 = vmul.f32 %v2326_v52, %v2301_v25  ;;  %v682_v39 = vmul.f32 %v2328_v53, %v2555_v12  ;;  %v683_v9 = vmul.f32 %v2328_v53, %v2558_v13 }
 0x11a   : > { %v1143_v10 = vmax.f32 %v1135_v2, 0.0  ;;  %v1093_v49 = vsel %vm929_vm2, %v1091_v37, %v1092_v7  ;;  %v643_v6 = vadd.f32 %v635_v36, %v615_v38  ;;  %v759_v11 = vmul.f32 %v2330_v54, %v2641_v27 }
 0x11b   : > { %v1041_v15 = vadd.f32 %v1017_v5, %v965_v41  ;;  %v722_v14 = vrot.slane %v682_v39, 1  ;;  %v723_v50 = vrot.slane %v683_v9, 1  ;;  %v760_v16 = vmul.f32 %v2330_v54, %v2644_v28 }
 0x11c   : > { %1560 = vmatprep.mubr.f32.mxu1 %v1143_v10  ;;  %v663_v52 = vadd.f32 %v655_v8, %v643_v6  ;;  %v798_v17 = vrot.slane %v759_v11, 1  ;;  %v835_v63 = vmul.f32 %v2334_v57, %v2301_v25  ;;  %v836_v53 = vmul.f32 %v2334_v57, %v2320_v48 }
 0x11d   : > { %v1117_v18 = vadd.f32 %v1093_v49, %v1041_v15  ;;  %v724_v19 = vsel %vm700_vm1, %v722_v14, %v723_v50  ;;  %v799_v20 = vrot.slane %v760_v16, 1  ;;  %v911_v21 = vmul.f32 %v2337_v58, %v2555_v12 }
 0x11e   : > { %v740_v22 = vadd.f32 %v724_v19, %v663_v52  ;;  %v874_v0 = vrot.slane %v835_v63, 1  ;;  %v875_v23 = vrot.slane %v836_v53, 1  ;;  %v912_v54 = vmul.f32 %v2337_v58, %v2558_v13 }
 0x11f   : > { %v1132_v35 = vadd.f32 %v2437_v32, %v1117_v18  ;;  %v800_v30 = vsel %vm700_vm1, %v798_v17, %v799_v20  ;;  %v951_v43 = vrot.slane %v911_v21, 2  ;;  %v988_v57 = vmul.f32 %v2344_v62, %v2641_v27 }
 0x120   : > { %v816_v44 = vadd.f32 %v800_v30, %v740_v22  ;;  %v876_v42 = vsel %vm700_vm1, %v874_v0, %v875_v23  ;;  %v952_v33 = vrot.slane %v912_v54, 2  ;;  %v989_v12 = vmul.f32 %v2344_v62, %v2644_v28 }
 0x121   : > { %v1140_v3 = vmax.f32 %v1132_v35, 0.0  ;;  %v1027_v34 = vrot.slane %v988_v57, 2  ;;  %v1064_v58 = vmul.f32 %v2389_v29, %v2301_v25  ;;  %v1065_v13 = vmul.f32 %v2389_v29, %v2320_v48  ;;  %v1483_v48 = vld [vmem:[%s2805_s6] ss:$0 sm:$0xff] }
 0x122   : > { %v892_v46 = vadd.f32 %v876_v42, %v816_v44  ;;  %v953_v47 = vsel %vm929_vm2, %v951_v43, %v952_v33  ;;  %v1028_v27 = vrot.slane %v989_v12, 2 }
 0x123   : > { %1555 = vmatmul.mubr.f32.gmra.mrb[2].mxu0 %v1140_v3  ;;  %v1103_v51 = vrot.slane %v1064_v58, 2  ;;  %v1104_v4 = vrot.slane %v1065_v13, 2 }
 0x124   : > { %v969_v55 = vadd.f32 %v953_v47, %v892_v46  ;;  %v1029_v59 = vsel %vm929_vm2, %v1027_v34, %v1028_v27 }
 0x125   : > { %v1105_v62 = vsel %vm929_vm2, %v1103_v51, %v1104_v4 }
 0x126   : > { %v1045_v28 = vadd.f32 %v1029_v59, %v969_v55 }
 0x128   : > { %v1121_v60 = vadd.f32 %v1105_v62, %v1045_v28 }
 0x12a   : > { %v1136_v25 = vadd.f32 %v2437_v32, %v1121_v60 }
 0x12c   : > { %v1144_v61 = vmax.f32 %v1136_v25, 0.0 }
 0x12e   : > { %1561 = vmatmul.mubr.f32.gmra.mrb[2].mxu1 %v1144_v61 }
 0x1c8   : > { %v1553_v29 = vpop.f32.mrb[0].mxu0 }
 0x1c9   : > { %v1240_v40 = vadd.f32 %v1553_v29, %v1483_v48  ;;  %v1234_v56 = vpop.f32.mrb[1].mxu0 }
 0x1ca   : > { %v1235_v24 = vadd.f32 %v1483_v48, %v1234_v56 }
 0x1cb   : > { %v1274_v26 = vmax.f32 %v1240_v40, 0.0 }
 0x1cc   : > { %v1273_v45 = vmax.f32 %v1235_v24, 0.0 }
 0x1cd   : > { %1282 = vst [vmem:[%s455_s16 + $0x8] sm:$0xff] %v1274_v26 }
 0x1ce   : > { %1281 = vst [vmem:[%s455_s16] sm:$0xff] %v1273_v45 }
 0x1d8   : > { %v1559_v1 = vpop.f32.mrb[0].mxu1 }
 0x1d9   : > { %v1260_v31 = vadd.f32 %v1559_v1, %v1483_v48  ;;  %v1254_v37 = vpop.f32.mrb[1].mxu1 }
 0x1da   : > { %v1255_v32 = vadd.f32 %v1483_v48, %v1254_v37 }
 0x1db   : > { %v1278_v38 = vmax.f32 %v1260_v31, 0.0 }
 0x1dc   : > { %v1277_v2 = vmax.f32 %v1255_v32, 0.0 }
 0x1dd   : > { %1286 = vst [vmem:[%s455_s16 + $0x28] sm:$0xff] %v1278_v38 }
 0x1de   : > { %1285 = vst [vmem:[%s455_s16 + $0x20] sm:$0xff] %v1277_v2 }
 0x1f6   : > { %v1556_v5 = vpop.f32.mrb[2].mxu0 }
 0x1f7   : > { %v1250_v7 = vadd.f32 %v1556_v5, %v1483_v48  ;;  %v1244_v36 = vpop.f32.mrb[3].mxu0 }
 0x1f8   : > { %v1245_v41 = vadd.f32 %v1483_v48, %v1244_v36 }
 0x1f9   : > { %v1276_v8 = vmax.f32 %v1250_v7, 0.0 }
 0x1fa   : > { %v1275_v39 = vmax.f32 %v1245_v41, 0.0 }
 0x1fb   : > { %1284 = vst [vmem:[%s455_s16 + $0x18] sm:$0xff] %v1276_v8 }
 0x1fc   : > { %1283 = vst [vmem:[%s455_s16 + $0x10] sm:$0xff] %v1275_v39 }
 0x201   : > { %v1562_v9 = vpop.f32.mrb[2].mxu1 }
 0x202   : > { %v1270_v10 = vadd.f32 %v1562_v9, %v1483_v48  ;;  %v1264_v49 = vpop.f32.mrb[3].mxu1 }
 0x203   : > { %v1265_v6 = vadd.f32 %v1483_v48, %v1264_v49 }
 0x204   : > { %v1280_v11 = vmax.f32 %v1270_v10, 0.0 }
 0x205   : > { %v1279_v15 = vmax.f32 %v1265_v6, 0.0 }
 0x206   : > { %1288 = vst [vmem:[%s455_s16 + $0x38] sm:$0xff] %v1280_v11 }
 0x207   : > { %1287 = vst [vmem:[%s455_s16 + $0x30] sm:$0xff] %v1279_v15 }
 0x208   : > { %1872 = shalt.err (!%p1869_p9)
}
 0x209   : > { %s1873_s19 = scalar_lea.hbm %s2750_s9, 1024  ;;  %s1877_s3 = scalar_lea.hbm %s2863_s18, 2048 }
 0x20a   : > { %p1874_p6 = scmp.ne.s32.totalorder %s2750_s9, %s1873_s19  ;;  %p1878_p3 = scmp.lt.u32.totalorder %s2750_s9, %s2863_s18 }
 0x20b   : > { %p1879_p7 = scmp.lt.u32.totalorder %s1877_s3, %s1873_s19  ;;  %p1881_p2 = scmp.lt.u32.totalorder %s1873_s19, %s2750_s9 }
 0x20c   : > { %p1875_p4 = pnand %p1874_p6, %p2864_p11 }
 0x20d   : > { %p1880_p12 = por %p1879_p7, %p1878_p3 }
 0x20e   : > { %p1876_p10 = pneg %p1875_p4 }
 0x20f   : > { %p1882_p0 = por %p1881_p2, %p1880_p12 }
 0x211   : > { %p1883_p8 = pnand %p1882_p0, %p1876_p10 }
 0x213   : > { %1886 = shalt.err (!%p1883_p8)
}
 0x214   : > { %s1964_s30 = smov 128   ;;  %s1965_s10 = smov 8  }
 0x215   : > { %1625 = dma.vmem_to_hbm [thread:$0]  (%p2864_p11), %s2745_s1, 1024, %s2750_s9, %s1290_s20, %s1964_s30, %s1964_s30, %s1965_s10  }
 0x216 PF: > { %s2865_s13 = sld [smem:[#allocation16_spill]]  ;;  %s2866_s22 = sld [smem:[#allocation20_spill]] }
 0x217   : > { %s2867_s24 = sld [smem:[#allocation19_spill]] }
 0x21c   : > { %s1320_s16 = sand.u32 1, %s2865_s13   ;;  %p2868_p1 = scmp.ne.s32.totalorder %s2866_s22, 0 }
 0x21d   : > { %p2869_p13 = scmp.ge.s32.totalorder %s2867_s24, 2  ;;  %s1321_s7 = scalar_lea.sflag [#allocation4], %s1320_s16 }
 0x21f   : > { %p1645_p5 = pnand %p2869_p13, %p2868_p1 }
 0x221   : > { %1924 = dma.done.wait (!%p1645_p5), %s1321_s7, 1024  }
 0x222   : > { %1926 = vsyncadd (!%p1645_p5), %s1321_s7, 4294966272  ;;  %s27_s29 = sadd.s32 1, %s2867_s24   ;;  %s2870_s14 = sld [smem:[#allocation17_spill]] }
 0x223   : > { %p24_p9 = scmp.ge.s32.totalorder %s27_s29, 4   ;;  %s2871_s26 = sld [smem:[#allocation22_spill]] }
 0x224   : > { %s2872_s27 = sld [smem:[#allocation18_spill]]  ;;  %s2873_s28 = sld [smem:[#allocation21_spill]] }
 0x225   : > { %s2874_s24 = smov %s1933_s25  ;;  %26 = sbr.rel (!%p24_p9) target bundleno = 13 (0xd), region = 125 }
 0x228   : > { %s2875_s25 = smov %s2870_s14 }
 0x22c   :  { %1326 = vsyncpa [#allocation3], 1 }
 0x22d   :  { %1328 = vsyncpa [#allocation3 + $0x1], 1 }
 0x22e   :  { %1329 = vsyncpa [#allocation6], 1 }
 0x22f   :  { %1331 = vsyncpa [#allocation6 + $0x1], 1 }
 0x230   :  { %1332 = vsyncpa [#allocation9], 1 }
 0x231   :  { %1333 = vsyncpa [#allocation4], 1 }
 0x232   :  { %1335 = vsyncpa [#allocation4 + $0x1], 1 }

</bundles_post_ra>
